<compile_context>
chip_gen: v7x
topology: tpu7x:2x2x1
jax: 0.10.0
libtpu: 0.0.40
codegen_flags: <defaults>
</compile_context>

<pallas_src>
import functools

import jax
import jax.numpy as jnp
from jax.experimental import pallas as pl
from jax.experimental.pallas import tpu as pltpu


def _conv_stats_kernel(xb_ref, w_ref, b_ref, conv_ref, psum_ref, psq_ref, *,
                       K, dil, stride, TH, Wo, Ho, NBH, compute_dtype):
    """Fused im2col conv (+bias) for one tile + partial BN statistics."""
    # xb_ref  : (1, TH_in, Wp, Cin)   halo'd input row-block (NHWC)
    # w_ref   : (K*K*Cin, Cpad)       tap-major packed weight (Cout zero-padded)
    # b_ref   : (1, Cpad)             conv bias (fp32, zero-padded)
    # conv_ref: (1, TH*Wo, Cpad)      conv+bias output tile (fp32)
    # psum_ref: (1, 1, Cpad)          partial sum  over valid rows of this tile
    # psq_ref : (1, 1, Cpad)          partial sum of squares over valid rows
    b = pl.program_id(0)
    hb = (b % NBH) if NBH > 1 else 0          # output-row block within the image

    Cin = xb_ref.shape[-1]
    h_span = (TH - 1) * stride + 1
    w_span = (Wo - 1) * stride + 1

    # im2col patch tile, sliced per tap directly off the ref (no full-x load).
    taps = []
    for kh in range(K):
        for kw in range(K):
            if stride == 1:
                tap = xb_ref[0, kh * dil: kh * dil + TH,
                             kw * dil: kw * dil + Wo, :]
            else:  # generic (untested by the toy case): strided window on the value
                tap = xb_ref[0, kh * dil: kh * dil + h_span,
                             kw * dil: kw * dil + w_span, :][::stride, ::stride, :]
            taps.append(tap)
    patches = jnp.concatenate(taps, axis=-1)                  # (TH, Wo, K*K*Cin)
    patches = patches.reshape(TH * Wo, K * K * Cin).astype(compute_dtype)

    # Single fused MXU matmul, fp32 accumulation (operands optionally bf16).
    acc = jnp.dot(patches, w_ref[...],
                  preferred_element_type=jnp.float32)          # (TH*Wo, Cpad)
    acc = acc + b_ref[...]

    # Partial BN stats; mask rows past Ho so a partial last row-block cannot
    # pollute the global batch statistics.
    valid_h = jnp.clip(Ho - hb * TH, 0, TH)
    r = jax.lax.broadcasted_iota(jnp.int32, (TH * Wo, 1), 0)
    acc_m = jnp.where(r < valid_h * Wo, acc, 0.0)
    psum_ref[0] = jnp.sum(acc_m, axis=0, keepdims=True)
    psq_ref[0] = jnp.sum(acc_m * acc_m, axis=0, keepdims=True)

    conv_ref[0] = acc


def _bn_relu_kernel(conv_ref, scale_ref, shift_ref, o_ref):
    """y = relu(conv * scale + shift) with per-channel (lane) scale/shift."""
    y = conv_ref[0] * scale_ref[...] + shift_ref[...]
    o_ref[0] = jnp.maximum(y, 0.0).astype(o_ref.dtype)


def conv_block_forward(x_nchw, w_oihw, bias, gamma, beta, *,
                       kernel_size=3, dilation=1, stride=1, eps=1e-5,
                       block_h=8, compute_dtype=jnp.float32):
    """Pallas ConvBlock forward. x_nchw: (N, Cin, H, W) -> (N, Cout, Ho, Wo)."""
    N, Cin, H, W = x_nchw.shape
    Cout = w_oihw.shape[0]
    K, dil = kernel_size, dilation
    pad = dil                                  # matches nn.Conv2d(padding=dilation)

    Ho = (H + 2 * pad - dil * (K - 1) - 1) // stride + 1
    Wo = (W + 2 * pad - dil * (K - 1) - 1) // stride + 1

    TH = max(1, min(block_h, Ho))              # output rows per tile
    NBH = -(-Ho // TH)                         # row blocks per image
    TH_in = (TH - 1) * stride + (K - 1) * dil + 1
    Cpad = ((Cout + 127) // 128) * 128         # lane-dense channel axis
    NB = N * NBH
    THWo = TH * Wo

    # ---- wrapper glue (plain JAX): layout, halo-blocked input, weight repack ----
    x_nhwc = jnp.transpose(x_nchw, (0, 2, 3, 1)).astype(jnp.float32)
    Hp_needed = (NBH * TH - 1) * stride + (K - 1) * dil + 1
    bottom = max(pad, Hp_needed - H - pad)
    x_pad = jnp.pad(x_nhwc, ((0, 0), (pad, bottom), (pad, pad), (0, 0)))
    Wp = W + 2 * pad
    # Overlapping (halo) row blocks -> non-overlapping BlockSpec tiles.
    # TODO(synk): replace this wrapper-side halo gather with in-kernel manual DMA
    # (memory_space=pl.ANY + pltpu.make_async_copy) to drop the extra HBM pass.
    x_blocked = jnp.stack(
        [x_pad[:, hb * TH * stride: hb * TH * stride + TH_in]
         for hb in range(NBH)], axis=1).reshape(NB, TH_in, Wp, Cin)

    # (Cout, Cin, K, K) -> (K*K*Cin, Cpad); tap-major rows matching the kernel's
    # im2col order; Cout zero-padded so MXU output / stores are 128-lane dense.
    w_k = jnp.transpose(w_oihw, (2, 3, 1, 0)).reshape(K * K * Cin, Cout)
    w_k = jnp.pad(w_k, ((0, 0), (0, Cpad - Cout))).astype(compute_dtype)
    b_p = jnp.pad(bias.astype(jnp.float32), (0, Cpad - Cout)).reshape(1, Cpad)

    cparams = pltpu.CompilerParams(
        dimension_semantics=("parallel",),       # shard tiles across TCs (v7x)
        vmem_limit_bytes=32 * 1024 * 1024,       # explicit; raise for larger tiles on v6e
    )

    conv_kernel = functools.partial(
        _conv_stats_kernel, K=K, dil=dil, stride=stride, TH=TH, Wo=Wo, Ho=Ho,
        NBH=NBH, compute_dtype=compute_dtype)

    # ---- pass 1: conv + bias + partial BN stats ----
    conv_out, psum, psq = pl.pallas_call(
        conv_kernel,
        grid=(NB,),
        in_specs=[
            pl.BlockSpec((1, TH_in, Wp, Cin), lambda b: (b, 0, 0, 0)),
            pl.BlockSpec((K * K * Cin, Cpad), lambda b: (0, 0)),
            pl.BlockSpec((1, Cpad), lambda b: (0, 0)),
        ],
        out_specs=(
            pl.BlockSpec((1, THWo, Cpad), lambda b: (b, 0, 0)),
            pl.BlockSpec((1, 1, Cpad), lambda b: (b, 0, 0)),
            pl.BlockSpec((1, 1, Cpad), lambda b: (b, 0, 0)),
        ),
        out_shape=(
            jax.ShapeDtypeStruct((NB, THWo, Cpad), jnp.float32),
            jax.ShapeDtypeStruct((NB, 1, Cpad), jnp.float32),
            jax.ShapeDtypeStruct((NB, 1, Cpad), jnp.float32),
        ),
        compiler_params=cparams,
    )(x_blocked, w_k, b_p)

    # ---- global BatchNorm statistics (training mode, biased variance) ----
    cnt = float(N * Ho * Wo)
    mean = jnp.sum(psum, axis=(0, 1)) / cnt                     # (Cpad,)
    var = jnp.maximum(jnp.sum(psq, axis=(0, 1)) / cnt - mean * mean, 0.0)
    inv = jax.lax.rsqrt(var + eps)
    g_p = jnp.pad(gamma.astype(jnp.float32), (0, Cpad - Cout))
    bt_p = jnp.pad(beta.astype(jnp.float32), (0, Cpad - Cout))
    scale = (g_p * inv).reshape(1, Cpad)
    shift = (bt_p - mean * g_p * inv).reshape(1, Cpad)

    # ---- pass 2: normalize + ReLU (lane-dense elementwise) ----
    out_p = pl.pallas_call(
        _bn_relu_kernel,
        grid=(NB,),
        in_specs=[
            pl.BlockSpec((1, THWo, Cpad), lambda b: (b, 0, 0)),
            pl.BlockSpec((1, Cpad), lambda b: (0, 0)),
            pl.BlockSpec((1, Cpad), lambda b: (0, 0)),
        ],
        out_specs=pl.BlockSpec((1, THWo, Cpad), lambda b: (b, 0, 0)),
        out_shape=jax.ShapeDtypeStruct((NB, THWo, Cpad), jnp.float32),
        compiler_params=cparams,
    )(conv_out, scale, shift)

    # ---- back to PyTorch NCHW, drop channel / row padding ----
    y = out_p.reshape(N, NBH * TH, Wo, Cpad)[:, :Ho, :, :Cout]
    return jnp.transpose(y, (0, 3, 1, 2))


def conv_block_reference(x_nchw, w_oihw, bias, gamma, beta, *,
                         kernel_size=3, dilation=1, stride=1, eps=1e-5):
    """Pure-JAX reference matching PyTorch ConvBlock forward (training-mode BN)."""
    y = jax.lax.conv_general_dilated(
        x_nchw, w_oihw,
        window_strides=(stride, stride),
        padding=[(dilation, dilation), (dilation, dilation)],
        rhs_dilation=(dilation, dilation),
        dimension_numbers=("NCHW", "OIHW", "NCHW"))
    y = y + bias.reshape(1, -1, 1, 1)
    mean = jnp.mean(y, axis=(0, 2, 3), keepdims=True)
    var = jnp.mean((y - mean) ** 2, axis=(0, 2, 3), keepdims=True)
    y = (y - mean) * jax.lax.rsqrt(var + eps)
    y = y * gamma.reshape(1, -1, 1, 1) + beta.reshape(1, -1, 1, 1)
    return jnp.maximum(y, 0.0)


if __name__ == "__main__":
    # ConvBlock(in_channels=4, out_channels=8), small deterministic setup.
    N, Cin, Cout, H, W = 2, 4, 8, 16, 16
    K = 3

    key = jax.random.PRNGKey(0)
    kx, kw, kb, kg, kbeta = jax.random.split(key, 5)
    x = jax.random.normal(kx, (N, Cin, H, W), jnp.float32)
    w = jax.random.normal(kw, (Cout, Cin, K, K), jnp.float32) * 0.1
    b = jax.random.normal(kb, (Cout,), jnp.float32) * 0.1
    gamma = 1.0 + 0.1 * jax.random.normal(kg, (Cout,), jnp.float32)
    beta = 0.1 * jax.random.normal(kbeta, (Cout,), jnp.float32)

    ref = conv_block_reference(x, w, b, gamma, beta)

    # fp32 path, even row tiling (grid = 2 images x 2 row-blocks).
    out = jax.block_until_ready(conv_block_forward(x, w, b, gamma, beta, block_h=8))
    assert out.shape == (N, Cout, H, W)
    assert jnp.allclose(out, ref, atol=1e-4, rtol=1e-4), "fp32 mismatch vs reference"

    # fp32 path, uneven tiling (exercises partial-block masking of global BN stats).
    out2 = jax.block_until_ready(conv_block_forward(x, w, b, gamma, beta, block_h=5))
    assert jnp.allclose(out2, ref, atol=1e-4, rtol=1e-4), "uneven-tile mismatch"

    # bf16 MXU operands with fp32 accumulation (v6e/v7x fast path), looser tol.
    out3 = jax.block_until_ready(
        conv_block_forward(x, w, b, gamma, beta, block_h=8,
                           compute_dtype=jnp.bfloat16))
    assert jnp.allclose(out3, ref, atol=5e-2, rtol=5e-2), "bf16 mismatch vs reference"

    print("KERNEL_OK")
</pallas_src>

<mosaic_0001>
module attributes {stable_mosaic.version = 11 : i64} {
  func.func @_conv_stats_kernel(%arg0: i32, %arg1: memref<1x10x18x4xf32, #tpu.memory_space<vmem>>, %arg2: memref<36x128xf32, #tpu.memory_space<vmem>>, %arg3: memref<1x128xf32, #tpu.memory_space<vmem>>, %arg4: memref<1x128x128xf32, #tpu.memory_space<vmem>>, %arg5: memref<1x1x128xf32, #tpu.memory_space<vmem>>, %arg6: memref<1x1x128xf32, #tpu.memory_space<vmem>>) attributes {dimension_semantics = [#tpu.dimension_semantics<parallel>], iteration_bounds = array<i64: 4>, scalar_prefetch = 0 : i64, scratch_operands = 0 : i64, tpu.core_type = #tpu.core_type<tc>, window_params = [{transform_indices = @transform_0, window_bounds = array<i64: 1, 10, 18, 4>}, {pipeline_mode = #tpu.pipeline_mode<synchronous>, transform_indices = @transform_1, window_bounds = array<i64: 36, 128>}, {pipeline_mode = #tpu.pipeline_mode<synchronous>, transform_indices = @transform_2, window_bounds = array<i64: 1, 128>}, {transform_indices = @transform_3, window_bounds = array<i64: 1, 128, 128>}, {transform_indices = @transform_4, window_bounds = array<i64: 1, 1, 128>}, {transform_indices = @transform_5, window_bounds = array<i64: 1, 1, 128>}]} {
    %c2_i32 = arith.constant 2 : i32
    %c0_i32 = arith.constant 0 : i32
    %0 = arith.cmpi eq, %c2_i32, %c0_i32 : i32
    %c1_i32 = arith.constant 1 : i32
    %1 = arith.select %0, %c1_i32, %c2_i32 : i32
    %2 = arith.remsi %arg0, %1 : i32
    %c0_i32_0 = arith.constant 0 : i32
    %3 = arith.cmpi ne, %2, %c0_i32_0 : i32
    %c0_i32_1 = arith.constant 0 : i32
    %4 = arith.cmpi slt, %2, %c0_i32_1 : i32
    %c0_i32_2 = arith.constant 0 : i32
    %5 = arith.cmpi slt, %1, %c0_i32_2 : i32
    %6 = arith.xori %4, %5 : i1
    %7 = arith.andi %6, %3 : i1
    %8 = arith.addi %2, %1 : i32
    %9 = arith.select %7, %8, %2 : i32
    %c0 = arith.constant 0 : index
    %c0_3 = arith.constant 0 : index
    %c0_4 = arith.constant 0 : index
    %c0_5 = arith.constant 0 : index
    %10 = vector.load %arg1[%c0, %c0_3, %c0_4, %c0_5] : memref<1x10x18x4xf32, #tpu.memory_space<vmem>>, vector<1x8x16x4xf32>
    %11 = vector.shape_cast %10 : vector<1x8x16x4xf32> to vector<8x16x4xf32>
    %c0_6 = arith.constant 0 : index
    %c0_7 = arith.constant 0 : index
    %c1 = arith.constant 1 : index
    %c0_8 = arith.constant 0 : index
    %12 = vector.load %arg1[%c0_6, %c0_7, %c1, %c0_8] : memref<1x10x18x4xf32, #tpu.memory_space<vmem>>, vector<1x8x16x4xf32>
    %13 = vector.shape_cast %12 : vector<1x8x16x4xf32> to vector<8x16x4xf32>
    %c0_9 = arith.constant 0 : index
    %c0_10 = arith.constant 0 : index
    %c2 = arith.constant 2 : index
    %c0_11 = arith.constant 0 : index
    %14 = vector.load %arg1[%c0_9, %c0_10, %c2, %c0_11] : memref<1x10x18x4xf32, #tpu.memory_space<vmem>>, vector<1x8x16x4xf32>
    %15 = vector.shape_cast %14 : vector<1x8x16x4xf32> to vector<8x16x4xf32>
    %c0_12 = arith.constant 0 : index
    %c1_13 = arith.constant 1 : index
    %c0_14 = arith.constant 0 : index
    %c0_15 = arith.constant 0 : index
    %16 = vector.load %arg1[%c0_12, %c1_13, %c0_14, %c0_15] : memref<1x10x18x4xf32, #tpu.memory_space<vmem>>, vector<1x8x16x4xf32>
    %17 = vector.shape_cast %16 : vector<1x8x16x4xf32> to vector<8x16x4xf32>
    %c0_16 = arith.constant 0 : index
    %c1_17 = arith.constant 1 : index
    %c1_18 = arith.constant 1 : index
    %c0_19 = arith.constant 0 : index
    %18 = vector.load %arg1[%c0_16, %c1_17, %c1_18, %c0_19] : memref<1x10x18x4xf32, #tpu.memory_space<vmem>>, vector<1x8x16x4xf32>
    %19 = vector.shape_cast %18 : vector<1x8x16x4xf32> to vector<8x16x4xf32>
    %c0_20 = arith.constant 0 : index
    %c1_21 = arith.constant 1 : index
    %c2_22 = arith.constant 2 : index
    %c0_23 = arith.constant 0 : index
    %20 = vector.load %arg1[%c0_20, %c1_21, %c2_22, %c0_23] : memref<1x10x18x4xf32, #tpu.memory_space<vmem>>, vector<1x8x16x4xf32>
    %21 = vector.shape_cast %20 : vector<1x8x16x4xf32> to vector<8x16x4xf32>
    %c0_24 = arith.constant 0 : index
    %c2_25 = arith.constant 2 : index
    %c0_26 = arith.constant 0 : index
    %c0_27 = arith.constant 0 : index
    %22 = vector.load %arg1[%c0_24, %c2_25, %c0_26, %c0_27] : memref<1x10x18x4xf32, #tpu.memory_space<vmem>>, vector<1x8x16x4xf32>
    %23 = vector.shape_cast %22 : vector<1x8x16x4xf32> to vector<8x16x4xf32>
    %c0_28 = arith.constant 0 : index
    %c2_29 = arith.constant 2 : index
    %c1_30 = arith.constant 1 : index
    %c0_31 = arith.constant 0 : index
    %24 = vector.load %arg1[%c0_28, %c2_29, %c1_30, %c0_31] : memref<1x10x18x4xf32, #tpu.memory_space<vmem>>, vector<1x8x16x4xf32>
    %25 = vector.shape_cast %24 : vector<1x8x16x4xf32> to vector<8x16x4xf32>
    %c0_32 = arith.constant 0 : index
    %c2_33 = arith.constant 2 : index
    %c2_34 = arith.constant 2 : index
    %c0_35 = arith.constant 0 : index
    %26 = vector.load %arg1[%c0_32, %c2_33, %c2_34, %c0_35] : memref<1x10x18x4xf32, #tpu.memory_space<vmem>>, vector<1x8x16x4xf32>
    %27 = vector.shape_cast %26 : vector<1x8x16x4xf32> to vector<8x16x4xf32>
    %28 = tpu.concatenate %11, %13, %15, %17, %19, %21, %23, %25, %27 in 2 : vector<8x16x4xf32>, vector<8x16x4xf32>, vector<8x16x4xf32>, vector<8x16x4xf32>, vector<8x16x4xf32>, vector<8x16x4xf32>, vector<8x16x4xf32>, vector<8x16x4xf32>, vector<8x16x4xf32> -> vector<8x16x36xf32>
    %29 = vector.shape_cast %28 : vector<8x16x36xf32> to vector<128x36xf32>
    %c0_36 = arith.constant 0 : index
    %c0_37 = arith.constant 0 : index
    %30 = vector.load %arg2[%c0_36, %c0_37] : memref<36x128xf32, #tpu.memory_space<vmem>>, vector<36x128xf32>
    %cst = arith.constant dense<0.000000e+00> : vector<128x128xf32>
    %31 = tpu.matmul %29, %30, %cst {dimension_numbers = #tpu.dot_dimension_numbers<[1], [0], [0], [1], [0, 0, 1, 1], [], []>} : vector<128x36xf32>, vector<36x128xf32>, vector<128x128xf32> -> vector<128x128xf32>
    %c0_38 = arith.constant 0 : index
    %c0_39 = arith.constant 0 : index
    %32 = vector.load %arg3[%c0_38, %c0_39] : memref<1x128xf32, #tpu.memory_space<vmem>>, vector<1x128xf32>
    %33 = vector.broadcast %32 : vector<1x128xf32> to vector<128x128xf32>
    %34 = arith.addf %31, %33 : vector<128x128xf32>
    %c8_i32 = arith.constant 8 : i32
    %35 = arith.muli %9, %c8_i32 : i32
    %c16_i32 = arith.constant 16 : i32
    %36 = arith.subi %c16_i32, %35 : i32
    %c0_i32_40 = arith.constant 0 : i32
    %c8_i32_41 = arith.constant 8 : i32
    %37 = arith.maxsi %c0_i32_40, %36 : i32
    %38 = arith.minsi %c8_i32_41, %37 : i32
    %39 = tpu.iota {dimensions = array<i32: 0>} : vector<128x1xi32>
    %c16_i32_42 = arith.constant 16 : i32
    %40 = arith.muli %38, %c16_i32_42 : i32
    %41 = vector.broadcast %40 : i32 to vector<128x1xi32>
    %42 = arith.cmpi slt, %39, %41 : vector<128x1xi32>
    %cst_43 = arith.constant 0.000000e+00 : f32
    %43 = vector.shape_cast %42 : vector<128x1xi1> to vector<128x1xi1>
    %44 = vector.broadcast %43 : vector<128x1xi1> to vector<128x128xi1>
    %45 = vector.broadcast %cst_43 : f32 to vector<128x128xf32>
    %46 = arith.select %44, %34, %45 : vector<128x128xi1>, vector<128x128xf32>
    %cst_44 = arith.constant dense<0.000000e+00> : vector<128xf32>
    %47 = vector.multi_reduction <add>, %46, %cst_44 [0] : vector<128x128xf32> to vector<128xf32>
    %48 = vector.shape_cast %47 : vector<128xf32> to vector<1x128xf32>
    %c0_45 = arith.constant 0 : index
    %c0_46 = arith.constant 0 : index
    %c0_47 = arith.constant 0 : index
    %49 = vector.load %arg5[%c0_45, %c0_46, %c0_47] : memref<1x1x128xf32, #tpu.memory_space<vmem>>, vector<1x1x128xf32>
    %50 = vector.shape_cast %49 : vector<1x1x128xf32> to vector<1x128xf32>
    %51 = vector.shape_cast %48 : vector<1x128xf32> to vector<1x1x128xf32>
    tpu.vector_store %arg5[%c0_45, %c0_46, %c0_47], %51 {strides = array<i32>} : memref<1x1x128xf32, #tpu.memory_space<vmem>>, vector<1x1x128xf32>,
    %52 = arith.mulf %46, %46 : vector<128x128xf32>
    %cst_48 = arith.constant dense<0.000000e+00> : vector<128xf32>
    %53 = vector.multi_reduction <add>, %52, %cst_48 [0] : vector<128x128xf32> to vector<128xf32>
    %54 = vector.shape_cast %53 : vector<128xf32> to vector<1x128xf32>
    %c0_49 = arith.constant 0 : index
    %c0_50 = arith.constant 0 : index
    %c0_51 = arith.constant 0 : index
    %55 = vector.load %arg6[%c0_49, %c0_50, %c0_51] : memref<1x1x128xf32, #tpu.memory_space<vmem>>, vector<1x1x128xf32>
    %56 = vector.shape_cast %55 : vector<1x1x128xf32> to vector<1x128xf32>
    %57 = vector.shape_cast %54 : vector<1x128xf32> to vector<1x1x128xf32>
    tpu.vector_store %arg6[%c0_49, %c0_50, %c0_51], %57 {strides = array<i32>} : memref<1x1x128xf32, #tpu.memory_space<vmem>>, vector<1x1x128xf32>,
    %c0_52 = arith.constant 0 : index
    %c0_53 = arith.constant 0 : index
    %c0_54 = arith.constant 0 : index
    %58 = vector.load %arg4[%c0_52, %c0_53, %c0_54] : memref<1x128x128xf32, #tpu.memory_space<vmem>>, vector<1x128x128xf32>
    %59 = vector.shape_cast %58 : vector<1x128x128xf32> to vector<128x128xf32>
    %60 = vector.shape_cast %34 : vector<128x128xf32> to vector<1x128x128xf32>
    tpu.vector_store %arg4[%c0_52, %c0_53, %c0_54], %60 {strides = array<i32>} : memref<1x128x128xf32, #tpu.memory_space<vmem>>, vector<1x128x128xf32>,
    return
  }
  func.func @transform_0(%arg0: i32) -> (i32, i32, i32, i32) {
    %c0_i32 = arith.constant 0 : i32
    %c0_i32_0 = arith.constant 0 : i32
    %c0_i32_1 = arith.constant 0 : i32
    %c0_i32_2 = arith.constant 0 : i32
    return %arg0, %c0_i32, %c0_i32_0, %c0_i32_1 : i32, i32, i32, i32
  }
  func.func @transform_1(%arg0: i32) -> (i32, i32) {
    %c0_i32 = arith.constant 0 : i32
    %c0_i32_0 = arith.constant 0 : i32
    %c0_i32_1 = arith.constant 0 : i32
    return %c0_i32, %c0_i32_0 : i32, i32
  }
  func.func @transform_2(%arg0: i32) -> (i32, i32) {
    %c0_i32 = arith.constant 0 : i32
    %c0_i32_0 = arith.constant 0 : i32
    %c0_i32_1 = arith.constant 0 : i32
    return %c0_i32, %c0_i32_0 : i32, i32
  }
  func.func @transform_3(%arg0: i32) -> (i32, i32, i32) {
    %c0_i32 = arith.constant 0 : i32
    %c0_i32_0 = arith.constant 0 : i32
    %c0_i32_1 = arith.constant 0 : i32
    return %arg0, %c0_i32, %c0_i32_0 : i32, i32, i32
  }
  func.func @transform_4(%arg0: i32) -> (i32, i32, i32) {
    %c0_i32 = arith.constant 0 : i32
    %c0_i32_0 = arith.constant 0 : i32
    %c0_i32_1 = arith.constant 0 : i32
    return %arg0, %c0_i32, %c0_i32_0 : i32, i32, i32
  }
  func.func @transform_5(%arg0: i32) -> (i32, i32, i32) {
    %c0_i32 = arith.constant 0 : i32
    %c0_i32_0 = arith.constant 0 : i32
    %c0_i32_1 = arith.constant 0 : i32
    return %arg0, %c0_i32, %c0_i32_0 : i32, i32, i32
  }
}

</mosaic_0001>

<bundles_post_ra>
// kernel: tpu_custom_call.1
= control target key start
LH: loop header
LB: loop body
LE: loop exit
PB: predicated region body
PF: predicated region fallthrough
CT: control target
= control target key end

     0   :  { %11 = vsyncpa [#allocation3], 0  ;;  %s2770_s0 = inlined_call_operand.vmem [shape: f32[4,10,18,4], index: 0, kind: input, shape index: {}]   ;;  %s2771_s1 = inlined_call_operand.vmem [shape: f32[36,128], index: 1, kind: input, shape index: {}]   ;;  %s2772_s2 = inlined_call_operand.vmem [shape: f32[1,128], index: 2, kind: input, shape index: {}]   ;;  %s2773_s3 = inlined_call_operand.hbm [shape: f32[4,128,128], index: 3, kind: output, shape index: {0}]   ;;  %s2774_s4 = inlined_call_operand.hbm [shape: f32[4,1,128], index: 4, kind: output, shape index: {1}]   ;;  %s2775_s5 = inlined_call_operand.hbm [shape: f32[4,1,128], index: 5, kind: output, shape index: {2}]  }
   0x1   :  { %13 = vsyncpa [#allocation3 + $0x1], 0 }
   0x2   :  { %14 = vsyncpa [#allocation5], 0 }
   0x3   :  { %16 = vsyncpa [#allocation5 + $0x1], 0  ;;  %s2017_s18 = smov 0   ;;  %s2019_s19 = smov 0  }
   0x4   :  { %s2021_s20 = smov 0   ;;  %s2023_s21 = smov 0  }
   0x5 LB: > { %s2038_s22 = sadd.s32 4294967295, %s1973_s21   ;;  %s1583_s23 = sadd.s32 4294967294, %s1973_s21   ;;  %s1973_s21 = sphi %s2023_s21, %s2781_s21   ;;  %s1969_s20 = sphi %s2021_s20, %s2780_s20   ;;  %s1965_s19 = sphi %s2019_s19, %s2779_s19   ;;  %s1961_s18 = sphi %s2017_s18, %s2778_s18  }
   0x6   : > { %s2042_s24 = sadd.s32 1, %s1973_s21   ;;  %s97_s25 = sadd.s32 1, %s1969_s20 }
   0x7   : > { %s94_s26 = ssub.s32 %s1973_s21, %s2042_s24  ;;  %p107_p0 = scmp.ne.s32.totalorder %s1969_s20, %s1965_s19 }
   0x8   : > { %p95_p1 = scmp.eq.s32.totalorder %s94_s26, 0  ;;  %p108_p2 = scmp.eq.s32.totalorder %s2038_s22, 3 }
   0x9   : > { %p113_p3 = scmp.ne.s32.totalorder %s1965_s19, %s1961_s18  ;;  %p114_p4 = scmp.eq.s32.totalorder %s1583_s23, 3 }
   0xa   : > { %s2055_s27 = scalar_select %p95_p1, %s1969_s20, %s97_s25  }
   0xb   : > { %p2057_p5 = por %p108_p2, %p107_p0  ;;  %p2061_p6 = por %p114_p4, %p113_p3 }
   0xc   : > { %p1586_p7 = scmp.ge.s32.totalorder %s1973_s21, 1  ;;  %p198_p8 = scmp.lt.s32.totalorder %s1973_s21, 5 }
   0xe   : > { %p199_p9 = pnand %p1586_p7, %p198_p8 }
   0xf   : > { %p234_p10 = scmp.lt.s32.totalorder (!%p199_p9), %s2038_s22, 3  ;;  %s1975_s10 = smov (!%p199_p9), 8   ;;  %v1045_v11 = vld [vmem:[%s2771_s1] sm:$0xff] (!%p199_p9)  ;;  %v1046_v12 = vld [vmem:[%s2771_s1 + $0x8] sm:$0xff] (!%p199_p9)  ;;  %v1047_v14 = vld [vmem:[%s2771_s1 + $0x10] sm:$0xff] (!%p199_p9)  ;;  %vm1106_vm0 = vcmask (!%p199_p9), 1043456  }
  0x10   : > { %202 = sbr.rel (%p199_p9) target bundleno = 678 (0x2a6), region = 32  ;;  %s1976_s11 = smov (!%p199_p9), 4   ;;  %v1778_v13 = vpack.c.bf16 (!%p199_p9), %v1046_v12, %v1045_v11  ;;  %v1048_v15 = vld [vmem:[%s2771_s1 + $0x18] sm:$0xff] (!%p199_p9)  ;;  %v1049_v19 = vld [vmem:[%s2771_s1 + $0x20] sm:$0xf] (!%p199_p9)  ;;  %vm909_vm1 = vcmask (!%p199_p9), 31744  }
  0x11   : > { %s1977_s12 = smov (!%p199_p9), 12   ;;  %s1978_s13 = smov (!%p199_p9), 16   ;;  %v1782_v18 = vpack.c.bf16 (!%p199_p9), %v1048_v15, %v1047_v14  ;;  %vm926_vm2 = vcmask (!%p199_p9), 64512   ;;  %vm943_vm3 = vcmask (!%p199_p9), 97280   ;;  %vm960_vm4 = vcmask (!%p199_p9), 130048  }
  0x12   : > { %s1979_s14 = smov (!%p199_p9), 20   ;;  %s1980_s26 = smov (!%p199_p9), 24   ;;  %1779 = vmatprep.subr.bf16.mxu0 (!%p199_p9), %v1778_v13  ;;  %1786 = vmatprep.subr.bf16.mxu1 (!%p199_p9), %v1778_v13  ;;  %vm977_vm5 = vcmask (!%p199_p9), 162816   ;;  %vm994_vm6 = vcmask (!%p199_p9), 195584   ;;  %vm1011_vm7 = vcmask (!%p199_p9), 228352   ;;  %vm1028_vm8 = vcmask (!%p199_p9), 261120  }
  0x13   : > { %1781 = vmatpush3.bf16.msra.mxu0 (!%p199_p9), %v1778_v13  ;;  %1789 = vmatpush3.bf16.msra.mxu1 (!%p199_p9), %v1778_v13  ;;  %s1981_s15 = smov (!%p199_p9), 28   ;;  %s1982_s25 = smov (!%p199_p9), 32   ;;  %vm1057_vm9 = vcmask (!%p199_p9), 293888  }
  0x14   : > { %1783 = vmatprep.subr.bf16.mxu0 (!%p199_p9), %v1782_v18  ;;  %1787 = vmatprep.subr.bf16.mxu1 (!%p199_p9), %v1782_v18  ;;  %p239_p11 = scmp.lt.s32.totalorder (!%p199_p9), %s2038_s22, 0  ;;  %s2573_s7 = sand.u32 (!%p199_p9), 1, %s1965_s19  }
  0x17   : > { %s235_s30 = scalar_select %p234_p10, %s2038_s22, 3  ;;  %1785 = vmatpush3.bf16.msra.mxu0 %v1782_v18  ;;  %1790 = vmatpush3.bf16.msra.mxu1 %v1782_v18 }
  0x18   : > { %1752 = vmatprep.subr.msk.mxu0 %vm1106_vm0, %v1049_v19  ;;  %1788 = vmatprep.subr.msk.mxu1 %vm1106_vm0, %v1049_v19 }
  0x19   : > { %s1792_s6 = smul.u32 240, %s235_s30 }
  0x1b   : > { %s2072_s9 = scalar_lea.vmem %s2770_s0, %s1792_s6  ;;  %1753 = vmatpush3.msk.msra.mxu0 %vm1106_vm0, %v1049_v19  ;;  %1791 = vmatpush3.msk.msra.mxu1 %vm1106_vm0, %v1049_v19 }
  0x1c   : > { %v283_v0 = vld [vmem:[%s2072_s9 + $0x2] sm:$0xff]  ;;  %v284_v2 = vld [vmem:[%s2072_s9 + $0xa] sm:$0xff]  ;;  %v2086_v5 = vld [vmem:[%s2072_s9 + $0x18] sm:$0xff] }
  0x1d   : > { %v267_v1 = vld [vmem:[%s2072_s9 + $0x1] sm:$0xff]  ;;  %477 = vrot.lane.b32.xlu1 %v283_v0, %s1975_s10  ;;  %v268_v3 = vld [vmem:[%s2072_s9 + $0x9] sm:$0xff]  ;;  %v269_v6 = vld [vmem:[%s2072_s9 + $0x19] sm:$0xff] }
  0x1e   : > { %413 = vrot.lane.b32.xlu0 %v267_v1, %s1976_s11  ;;  %v2083_v4 = vld [vmem:[%s2072_s9 + $0x20] sm:$0xff]  ;;  %v2102_v9 = vld [vmem:[%s2072_s9 + $0x30] sm:$0xff]  ;;  %v2125_v17 = vld [vmem:[%s2072_s9 + $0x38] sm:$0xff] }
  0x1f   : > { %v1624_v7 = vld [vmem:[%s2072_s9 + $0x1a] sm:$0xff]  ;;  %v1625_v10 = vld [vmem:[%s2072_s9 + $0x22] sm:$0xff]  ;;  %v1656_v16 = vld [vmem:[%s2072_s9 + $0x31] sm:$0xff] }
  0x20   : > { %v1609_v8 = vld [vmem:[%s2072_s9 + $0x21] sm:$0xff]  ;;  %v1672_v20 = vld [vmem:[%s2072_s9 + $0x32] sm:$0xff]  ;;  %v1658_v24 = vld [vmem:[%s2072_s9 + $0x49] sm:$0xff] }
  0x21   : > { %479 = vrot.lane.b32.xlu1 %v284_v2, %s1975_s10  ;;  %v1657_v21 = vld [vmem:[%s2072_s9 + $0x39] sm:$0xff]  ;;  %v2148_v23 = vld [vmem:[%s2072_s9 + $0x48] sm:$0xff]  ;;  %v2158_v25 = vld [vmem:[%s2072_s9 + $0x50] sm:$0xff] }
  0x22   : > { %415 = vrot.lane.b32.xlu0 %v268_v3, %s1976_s11  ;;  %v1673_v22 = vld [vmem:[%s2072_s9 + $0x3a] sm:$0xff]  ;;  %v1674_v26 = vld [vmem:[%s2072_s9 + $0x4a] sm:$0xff]  ;;  %v1675_v28 = vld [vmem:[%s2072_s9 + $0x52] sm:$0xff] }
  0x23   : > { %v1659_v27 = vld [vmem:[%s2072_s9 + $0x51] sm:$0xff]  ;;  %v2178_v29 = vld [vmem:[%s2072_s9 + $0x60] sm:$0xff]  ;;  %v2188_v31 = vld [vmem:[%s2072_s9 + $0x68] sm:$0xff] }
  0x24   : > { %v1660_v30 = vld [vmem:[%s2072_s9 + $0x61] sm:$0xff]  ;;  %v1661_v33 = vld [vmem:[%s2072_s9 + $0x69] sm:$0xff]  ;;  %v2208_v37 = vld [vmem:[%s2072_s9 + $0x78] sm:$0xff] }
  0x25   : > { %543 = vrot.lane.b32.xlu1 %v2083_v4, %s1977_s12  ;;  %v1676_v32 = vld [vmem:[%s2072_s9 + $0x62] sm:$0xff]  ;;  %v1677_v34 = vld [vmem:[%s2072_s9 + $0x6a] sm:$0xff]  ;;  %v1662_v42 = vld [vmem:[%s2072_s9 + $0x79] sm:$0xff] }
  0x26   : > { %541 = vrot.lane.b32.xlu0 %v2086_v5, %s1977_s12  ;;  %v2222_v43 = vld [vmem:[%s2072_s9 + $0x80] sm:$0xff]  ;;  %v2255_v62 = vld [vmem:[%s2072_s9 + $0x90] sm:$0xff]  ;;  %v252_v2 = vld [vmem:[%s2072_s9 + $0x8] sm:$0xff] }
  0x27   : > { %v1678_v48 = vld [vmem:[%s2072_s9 + $0x7a] sm:$0xff]  ;;  %v1679_v54 = vld [vmem:[%s2072_s9 + $0x82] sm:$0xff]  ;;  %v1664_v15 = vld [vmem:[%s2072_s9 + $0x91] sm:$0xff] }
  0x28   : > { %v1663_v49 = vld [vmem:[%s2072_s9 + $0x81] sm:$0xff] }
  0x29   : > { %417 = vrot.lane.b32.xlu1 %v269_v6, %s1976_s11  ;;  %v251_v57 = vld [vmem:[%s2072_s9] sm:$0xff] }
  0x2a   : > { %605 = vrot.lane.b32.xlu0 %v269_v6, %s1978_s13 }
  0x2d   : > { %669 = vrot.lane.b32.xlu1 %v1624_v7, %s1979_s14 }
  0x2e   : > { %607 = vrot.lane.b32.xlu0 %v1609_v8, %s1978_s13 }
  0x31   : > { %481 = vrot.lane.b32.xlu1 %v1624_v7, %s1975_s10 }
  0x32   : > { %419 = vrot.lane.b32.xlu0 %v1609_v8, %s1976_s11 }
  0x35   : > { %733 = vrot.lane.b32.xlu1 %v2102_v9, %s1980_s26 }
  0x36   : > { %671 = vrot.lane.b32.xlu0 %v1625_v10, %s1979_s14 }
  0x39   : > { %545 = vrot.lane.b32.xlu1 %v2102_v9, %s1977_s12 }
  0x3a   : > { %483 = vrot.lane.b32.xlu0 %v1625_v10, %s1975_s10 }
  0x3d   : > { %797 = vrot.lane.b32.xlu1 %v1656_v16, %s1981_s15 }
  0x3e   : > { %735 = vrot.lane.b32.xlu0 %v2125_v17, %s1980_s26 }
  0x41   : > { %609 = vrot.lane.b32.xlu1 %v1656_v16, %s1978_s13 }
  0x42   : > { %547 = vrot.lane.b32.xlu0 %v2125_v17, %s1977_s12 }
  0x45   : > { %861 = vrot.lane.b32.xlu1 %v1672_v20, %s1982_s25 }
  0x46   : > { %799 = vrot.lane.b32.xlu0 %v1657_v21, %s1981_s15 }
  0x49   : > { %611 = vrot.lane.b32.xlu1 %v1657_v21, %s1978_s13 }
  0x4a   : > { %421 = vrot.lane.b32.xlu0 %v1656_v16, %s1976_s11  ;;  %v2280_v16 = vld [vmem:[%s2072_s9 + $0x98] sm:$0xff] }
  0x4d   : > { %863 = vrot.lane.b32.xlu1 %v1673_v22, %s1982_s25 }
  0x4e   : > { %673 = vrot.lane.b32.xlu0 %v1672_v20, %s1979_s14 }
  0x51   : > { %485 = vrot.lane.b32.xlu1 %v1672_v20, %s1975_s10 }
  0x52   : > { %423 = vrot.lane.b32.xlu0 %v1657_v21, %s1976_s11 }
  0x55   : > { %737 = vrot.lane.b32.xlu1 %v2148_v23, %s1980_s26 }
  0x56   : > { %675 = vrot.lane.b32.xlu0 %v1673_v22, %s1979_s14 }
  0x59   : > { %549 = vrot.lane.b32.xlu1 %v2148_v23, %s1977_s12 }
  0x5a   : > { %487 = vrot.lane.b32.xlu0 %v1673_v22, %s1975_s10 }
  0x5d   : > { %801 = vrot.lane.b32.xlu1 %v1658_v24, %s1981_s15 }
  0x5e   : > { %739 = vrot.lane.b32.xlu0 %v2158_v25, %s1980_s26 }
  0x61   : > { %613 = vrot.lane.b32.xlu1 %v1658_v24, %s1978_s13 }
  0x62   : > { %551 = vrot.lane.b32.xlu0 %v2158_v25, %s1977_s12 }
  0x65   : > { %865 = vrot.lane.b32.xlu1 %v1674_v26, %s1982_s25 }
  0x66   : > { %803 = vrot.lane.b32.xlu0 %v1659_v27, %s1981_s15 }
  0x69   : > { %615 = vrot.lane.b32.xlu1 %v1659_v27, %s1978_s13 }
  0x6a   : > { %425 = vrot.lane.b32.xlu0 %v1658_v24, %s1976_s11 }
  0x6d   : > { %867 = vrot.lane.b32.xlu1 %v1675_v28, %s1982_s25 }
  0x6e   : > { %677 = vrot.lane.b32.xlu0 %v1674_v26, %s1979_s14 }
  0x71   : > { %489 = vrot.lane.b32.xlu1 %v1674_v26, %s1975_s10 }
  0x72   : > { %427 = vrot.lane.b32.xlu0 %v1659_v27, %s1976_s11 }
  0x75   : > { %741 = vrot.lane.b32.xlu1 %v2178_v29, %s1980_s26 }
  0x76   : > { %679 = vrot.lane.b32.xlu0 %v1675_v28, %s1979_s14 }
  0x79   : > { %553 = vrot.lane.b32.xlu1 %v2178_v29, %s1977_s12 }
  0x7a   : > { %491 = vrot.lane.b32.xlu0 %v1675_v28, %s1975_s10 }
  0x7d   : > { %805 = vrot.lane.b32.xlu1 %v1660_v30, %s1981_s15 }
  0x7e   : > { %743 = vrot.lane.b32.xlu0 %v2188_v31, %s1980_s26 }
  0x81   : > { %617 = vrot.lane.b32.xlu1 %v1660_v30, %s1978_s13 }
  0x82   : > { %555 = vrot.lane.b32.xlu0 %v2188_v31, %s1977_s12 }
  0x85   : > { %869 = vrot.lane.b32.xlu1 %v1676_v32, %s1982_s25 }
  0x86   : > { %807 = vrot.lane.b32.xlu0 %v1661_v33, %s1981_s15 }
  0x89   : > { %619 = vrot.lane.b32.xlu1 %v1661_v33, %s1978_s13 }
  0x8a   : > { %429 = vrot.lane.b32.xlu0 %v1660_v30, %s1976_s11 }
  0x8d   : > { %871 = vrot.lane.b32.xlu1 %v1677_v34, %s1982_s25 }
  0x8e   : > { %681 = vrot.lane.b32.xlu0 %v1676_v32, %s1979_s14 }
  0x8f   : > { %v478_v35 = vpop.permute.xlu1 %477 }
  0x90   : > { %v414_v36 = vpop.permute.xlu0 %413 }
  0x91   : > { %493 = vrot.lane.b32.xlu1 %v1676_v32, %s1975_s10  ;;  %v910_v58 = vsel %vm909_vm1, %v251_v57, %v414_v36  ;;  %v1680_v32 = vld [vmem:[%s2072_s9 + $0x92] sm:$0xff] }
  0x92   : > { %431 = vrot.lane.b32.xlu0 %v1661_v33, %s1976_s11  ;;  %v927_v61 = vsel %vm926_vm2, %v910_v58, %v478_v35  ;;  %v1665_v33 = vld [vmem:[%s2072_s9 + $0x99] sm:$0xff] }
  0x93   : > { %v2210_v38 = vpop.permute.xlu1 %479 }
  0x94   : > { %v416_v39 = vpop.permute.xlu0 %415 }
  0x95   : > { %745 = vrot.lane.b32.xlu1 %v2208_v37, %s1980_s26  ;;  %v911_v8 = vsel %vm909_vm1, %v252_v2, %v416_v39  ;;  %v1681_v39 = vld [vmem:[%s2072_s9 + $0x9a] sm:$0xff] }
  0x96   : > { %683 = vrot.lane.b32.xlu0 %v1677_v34, %s1979_s14  ;;  %v928_v14 = vsel %vm926_vm2, %v911_v8, %v2210_v38 }
  0x97   : > { %v2215_v40 = vpop.permute.xlu1 %543 }
  0x98   : > { %v542_v41 = vpop.permute.xlu0 %541  ;;  %v945_v18 = vsel %vm943_vm3, %v928_v14, %v2215_v40 }
  0x99   : > { %557 = vrot.lane.b32.xlu1 %v2208_v37, %s1977_s12  ;;  %v944_v63 = vsel %vm943_vm3, %v927_v61, %v542_v41  ;;  %v1666_v61 = vld [vmem:[%s2072_s9 + $0xa9] sm:$0xff] }
  0x9a   : > { %495 = vrot.lane.b32.xlu0 %v1677_v34, %s1975_s10 }
  0x9b   : > { %v2224_v44 = vpop.permute.xlu1 %417 }
  0x9c   : > { %v606_v45 = vpop.permute.xlu0 %605 }
  0x9d   : > { %809 = vrot.lane.b32.xlu1 %v1662_v42, %s1981_s15  ;;  %v961_v3 = vsel %vm960_vm4, %v944_v63, %v606_v45  ;;  %v2349_v63 = vld [vmem:[%s2072_s9 + $0xb0] sm:$0xff] }
  0x9e   : > { %747 = vrot.lane.b32.xlu0 %v2222_v43, %s1980_s26 }
  0x9f   : > { %v670_v46 = vpop.permute.xlu1 %669 }
  0xa0   : > { %v608_v47 = vpop.permute.xlu0 %607  ;;  %v978_v6 = vsel %vm977_vm5, %v961_v3, %v670_v46  ;;  %v912_v46 = vsel %vm909_vm1, %v2086_v5, %v2224_v44 }
  0xa1   : > { %621 = vrot.lane.b32.xlu1 %v1662_v42, %s1978_s13  ;;  %v962_v21 = vsel %vm960_vm4, %v945_v18, %v608_v47  ;;  %v1683_v18 = vld [vmem:[%s2072_s9 + $0xb2] sm:$0xff] }
  0xa2   : > { %559 = vrot.lane.b32.xlu0 %v2222_v43, %s1977_s12 }
  0xa3   : > { %v2234_v50 = vpop.permute.xlu1 %481 }
  0xa4   : > { %v2236_v51 = vpop.permute.xlu0 %419  ;;  %v929_v47 = vsel %vm926_vm2, %v912_v46, %v2234_v50  ;;  %v1668_v46 = vld [vmem:[%s2072_s9 + $0xc1] sm:$0xff] }
  0xa5   : > { %873 = vrot.lane.b32.xlu1 %v1678_v48, %s1982_s25 }
  0xa6   : > { %811 = vrot.lane.b32.xlu0 %v1663_v49, %s1981_s15 }
  0xa7   : > { %v734_v52 = vpop.permute.xlu1 %733 }
  0xa8   : > { %v672_v53 = vpop.permute.xlu0 %671  ;;  %v995_v7 = vsel %vm994_vm6, %v978_v6, %v734_v52 }
  0xa9   : > { %623 = vrot.lane.b32.xlu1 %v1663_v49, %s1978_s13  ;;  %v979_v22 = vsel %vm977_vm5, %v962_v21, %v672_v53 }
  0xaa   : > { %433 = vrot.lane.b32.xlu0 %v1662_v42, %s1976_s11 }
  0xab   : > { %v2243_v55 = vpop.permute.xlu1 %545 }
  0xac   : > { %v2245_v56 = vpop.permute.xlu0 %483 }
  0xad   : > { %875 = vrot.lane.b32.xlu1 %v1679_v54, %s1982_s25 }
  0xae   : > { %685 = vrot.lane.b32.xlu0 %v1678_v48, %s1979_s14 }
  0xaf   : > { %v798_v59 = vpop.permute.xlu1 %797 }
  0xb0   : > { %v736_v60 = vpop.permute.xlu0 %735  ;;  %v1012_v10 = vsel %vm1011_vm7, %v995_v7, %v798_v59  ;;  %v913_v59 = vsel %vm909_vm1, %v2083_v4, %v2236_v51 }
  0xb1   : > { %497 = vrot.lane.b32.xlu1 %v1678_v48, %s1975_s10  ;;  %v996_v24 = vsel %vm994_vm6, %v979_v22, %v736_v60  ;;  %v2323_v48 = vld [vmem:[%s2072_s9 + $0xa8] sm:$0xff]  ;;  %v930_v60 = vsel %vm926_vm2, %v913_v59, %v2245_v56 }
  0xb2   : > { %435 = vrot.lane.b32.xlu0 %v1663_v49, %s1976_s11  ;;  %v946_v49 = vsel %vm943_vm3, %v929_v47, %v2243_v55  ;;  %v1653_v47 = vld [vmem:[%s2072_s9 + $0xc8] sm:$0xff] }
  0xb3   : > { %v2258_v0 = vpop.permute.xlu1 %609 }
  0xb4   : > { %v2260_v1 = vpop.permute.xlu0 %547  ;;  %v963_v5 = vsel %vm960_vm4, %v946_v49, %v2258_v0 }
  0xb5   : > { %749 = vrot.lane.b32.xlu1 %v2255_v62, %s1980_s26  ;;  %v947_v0 = vsel %vm943_vm3, %v930_v60, %v2260_v1 }
  0xb6   : > { %687 = vrot.lane.b32.xlu0 %v1679_v54, %s1979_s14 }
  0xb7   : > { %v862_v11 = vpop.permute.xlu1 %861 }
  0xb8   : > { %v800_v12 = vpop.permute.xlu0 %799  ;;  %v1029_v13 = vsel %vm1028_vm8, %v1012_v10, %v862_v11  ;;  %v1682_v10 = vld [vmem:[%s2072_s9 + $0xaa] sm:$0xff] }
  0xb9   : > { %561 = vrot.lane.b32.xlu1 %v2255_v62, %s1977_s12  ;;  %1754 = vmatprep.mubr.msk.f32.mxu0 %vm1057_vm9, %v1029_v13  ;;  %v1013_v26 = vsel %vm1011_vm7, %v996_v24, %v800_v12  ;;  %v1667_v11 = vld [vmem:[%s2072_s9 + $0xb1] sm:$0xff] }
  0xba   : > { %499 = vrot.lane.b32.xlu0 %v1679_v54, %s1975_s10 }
  0xbb   : > { %v612_v19 = vpop.permute.xlu1 %611 }
  0xbc   : > { %v2284_v20 = vpop.permute.xlu0 %421  ;;  %v964_v51 = vsel %vm960_vm4, %v947_v0, %v612_v19  ;;  %v1639_v0 = vld [vmem:[%s2072_s9 + $0xca] sm:$0xff] }
  0xbd   : > { %813 = vrot.lane.b32.xlu1 %v1664_v15, %s1981_s15 }
  0xbe   : > { %751 = vrot.lane.b32.xlu0 %v2280_v16, %s1980_s26 }
  0xbf   : > { %v864_v27 = vpop.permute.xlu1 %863 }
  0xc0   : > { %v674_v28 = vpop.permute.xlu0 %673  ;;  %v1030_v30 = vsel %vm1028_vm8, %v1013_v26, %v864_v27  ;;  %v914_v26 = vsel %vm909_vm1, %v2102_v9, %v2284_v20 }
  0xc1   : > { %625 = vrot.lane.b32.xlu1 %v1664_v15, %s1978_s13  ;;  %1755 = vmatmul.mubr.msk.f32.vlgmr.msra.gmra.mrb[0].mxu0 %vm1057_vm9, %v1030_v30  ;;  %v980_v44 = vsel %vm977_vm5, %v963_v5, %v674_v28  ;;  %v1652_v28 = vld [vmem:[%s2072_s9 + $0xc0] sm:$0xff] }
  0xc2   : > { %563 = vrot.lane.b32.xlu0 %v2280_v16, %s1977_s12 }
  0xc3   : > { %v2300_v34 = vpop.permute.xlu1 %485 }
  0xc4   : > { %v2302_v35 = vpop.permute.xlu0 %423  ;;  %v931_v27 = vsel %vm926_vm2, %v914_v26, %v2300_v34  ;;  %v1686_v26 = vld [vmem:[%s2072_s9 + $0xda] sm:$0xff] }
  0xc5   : > { %877 = vrot.lane.b32.xlu1 %v1680_v32, %s1982_s25 }
  0xc6   : > { %815 = vrot.lane.b32.xlu0 %v1665_v33, %s1981_s15 }
  0xc7   : > { %v738_v36 = vpop.permute.xlu1 %737 }
  0xc8   : > { %v676_v38 = vpop.permute.xlu0 %675  ;;  %v997_v50 = vsel %vm994_vm6, %v980_v44, %v738_v36 }
  0xc9   : > { %627 = vrot.lane.b32.xlu1 %v1665_v33, %s1978_s13  ;;  %v981_v3 = vsel %vm977_vm5, %v964_v51, %v676_v38 }
  0xca   : > { %437 = vrot.lane.b32.xlu0 %v1664_v15, %s1976_s11 }
  0xcb   : > { %v2309_v40 = vpop.permute.xlu1 %549 }
  0xcc   : > { %v2311_v41 = vpop.permute.xlu0 %487  ;;  %v948_v30 = vsel %vm943_vm3, %v931_v27, %v2309_v40 }
  0xcd   : > { %879 = vrot.lane.b32.xlu1 %v1681_v39, %s1982_s25 }
  0xce   : > { %689 = vrot.lane.b32.xlu0 %v1680_v32, %s1979_s14 }
  0xcf   : > { %v802_v42 = vpop.permute.xlu1 %801 }
  0xd0   : > { %v740_v45 = vpop.permute.xlu0 %739  ;;  %v1014_v54 = vsel %vm1011_vm7, %v997_v50, %v802_v42  ;;  %v915_v42 = vsel %vm909_vm1, %v2125_v17, %v2302_v35 }
  0xd1   : > { %501 = vrot.lane.b32.xlu1 %v1680_v32, %s1975_s10  ;;  %v998_v56 = vsel %vm994_vm6, %v981_v3, %v740_v45  ;;  %v932_v45 = vsel %vm926_vm2, %v915_v42, %v2311_v41  ;;  %v1655_v3 = vld [vmem:[%s2072_s9 + $0xe0] sm:$0xff] }
  0xd2   : > { %439 = vrot.lane.b32.xlu0 %v1665_v33, %s1976_s11 }
  0xd3   : > { %v614_v52 = vpop.permute.xlu1 %613 }
  0xd4   : > { %v2327_v53 = vpop.permute.xlu0 %551  ;;  %v965_v36 = vsel %vm960_vm4, %v948_v30, %v614_v52 }
  0xd5   : > { %753 = vrot.lane.b32.xlu1 %v2323_v48, %s1980_s26  ;;  %v949_v49 = vsel %vm943_vm3, %v932_v45, %v2327_v53 }
  0xd6   : > { %691 = vrot.lane.b32.xlu0 %v1681_v39, %s1979_s14 }
  0xd7   : > { %v866_v55 = vpop.permute.xlu1 %865 }
  0xd8   : > { %v804_v57 = vpop.permute.xlu0 %803  ;;  %v1031_v58 = vsel %vm1028_vm8, %v1014_v54, %v866_v55  ;;  %v1684_v55 = vld [vmem:[%s2072_s9 + $0xc2] sm:$0xff] }
  0xd9   : > { %565 = vrot.lane.b32.xlu1 %v2323_v48, %s1977_s12  ;;  %1757 = vmatprep.mubr.msk.f32.mxu0 %vm1057_vm9, %v1031_v58  ;;  %v1015_v6 = vsel %vm1011_vm7, %v998_v56, %v804_v57  ;;  %v1669_v57 = vld [vmem:[%s2072_s9 + $0xc9] sm:$0xff]  ;;  %v1654_v56 = vld [vmem:[%s2072_s9 + $0xd8] sm:$0xff] }
  0xda   : > { %503 = vrot.lane.b32.xlu0 %v1681_v39, %s1975_s10 }
  0xdb   : > { %v616_v2 = vpop.permute.xlu1 %615 }
  0xdc   : > { %v2353_v4 = vpop.permute.xlu0 %425  ;;  %v966_v17 = vsel %vm960_vm4, %v949_v49, %v616_v2 }
  0xdd   : > { %817 = vrot.lane.b32.xlu1 %v1666_v61, %s1981_s15 }
  0xde   : > { %755 = vrot.lane.b32.xlu0 %v2349_v63, %s1980_s26 }
  0xdf   : > { %v868_v7 = vpop.permute.xlu1 %867 }
  0xe0   : > { %v678_v1 = vpop.permute.xlu0 %677  ;;  %v1032_v8 = vsel %vm1028_vm8, %v1015_v6, %v868_v7 }
  0xe1   : > { %629 = vrot.lane.b32.xlu1 %v1666_v61, %s1978_s13  ;;  %1758 = vmatmul.mubr.msk.f32.gmra.mrb[2].mxu0 %vm1057_vm9, %v1032_v8  ;;  %v982_v9 = vsel %vm977_vm5, %v965_v36, %v678_v1  ;;  %v916_v1 = vsel %vm909_vm1, %v2148_v23, %v2353_v4  ;;  %v1687_v4 = vld [vmem:[%s2072_s9 + $0xe2] sm:$0xff] }
  0xe2   : > { %567 = vrot.lane.b32.xlu0 %v2349_v63, %s1977_s12 }
  0xe3   : > { %v2369_v12 = vpop.permute.xlu1 %489 }
  0xe4   : > { %v2371_v13 = vpop.permute.xlu0 %427  ;;  %v933_v8 = vsel %vm926_vm2, %v916_v1, %v2369_v12 }
  0xe5   : > { %881 = vrot.lane.b32.xlu1 %v1682_v10, %s1982_s25  ;;  %v917_v30 = vsel %vm909_vm1, %v2158_v25, %v2371_v13 }
  0xe6   : > { %819 = vrot.lane.b32.xlu0 %v1667_v11, %s1981_s15 }
  0xe7   : > { %v742_v14 = vpop.permute.xlu1 %741 }
  0xe8   : > { %v680_v15 = vpop.permute.xlu0 %679  ;;  %v999_v20 = vsel %vm994_vm6, %v982_v9, %v742_v14 }
  0xe9   : > { %631 = vrot.lane.b32.xlu1 %v1667_v11, %s1978_s13  ;;  %v983_v35 = vsel %vm977_vm5, %v966_v17, %v680_v15 }
  0xea   : > { %441 = vrot.lane.b32.xlu0 %v1666_v61, %s1976_s11 }
  0xeb   : > { %v2378_v19 = vpop.permute.xlu1 %553 }
  0xec   : > { %v2380_v21 = vpop.permute.xlu0 %491  ;;  %v950_v14 = vsel %vm943_vm3, %v933_v8, %v2378_v19 }
  0xed   : > { %883 = vrot.lane.b32.xlu1 %v1683_v18, %s1982_s25 }
  0xee   : > { %693 = vrot.lane.b32.xlu0 %v1682_v10, %s1979_s14 }
  0xef   : > { %v806_v22 = vpop.permute.xlu1 %805 }
  0xf0   : > { %v744_v24 = vpop.permute.xlu0 %743  ;;  %v1016_v34 = vsel %vm1011_vm7, %v999_v20, %v806_v22 }
  0xf1   : > { %505 = vrot.lane.b32.xlu1 %v1682_v10, %s1975_s10  ;;  %v1000_v41 = vsel %vm994_vm6, %v983_v35, %v744_v24  ;;  %v1671_v10 = vld [vmem:[%s2072_s9 + $0xe1] sm:$0xff] }
  0xf2   : > { %443 = vrot.lane.b32.xlu0 %v1667_v11, %s1976_s11  ;;  %v1670_v11 = vld [vmem:[%s2072_s9 + $0xd9] sm:$0xff]  ;;  %s240_s9 = ssub.s32 0, %s2038_s22 }
  0xf3   : > { %v618_v32 = vpop.permute.xlu1 %617  ;;  %s1589_s11 = smin.u32 %s2038_s22, %s240_s9  ;;  %s1722_s9 = sshll.u32 %s2038_s22, 11 }
  0xf4   : > { %v2394_v33 = vpop.permute.xlu0 %555  ;;  %v967_v22 = vsel %vm960_vm4, %v950_v14, %v618_v32  ;;  %v934_v32 = vsel %vm926_vm2, %v917_v30, %v2380_v21 }
  0xf5   : > { %757 = vrot.lane.b32.xlu1 %v1652_v28, %s1980_s26  ;;  %v951_v36 = vsel %vm943_vm3, %v934_v32, %v2394_v33 }
  0xf6   : > { %695 = vrot.lane.b32.xlu0 %v1683_v18, %s1979_s14 }
  0xf7   : > { %v870_v38 = vpop.permute.xlu1 %869 }
  0xf8   : > { %v808_v39 = vpop.permute.xlu0 %807  ;;  %v1033_v40 = vsel %vm1028_vm8, %v1016_v34, %v870_v38 }
  0xf9   : > { %569 = vrot.lane.b32.xlu1 %v1652_v28, %s1977_s12  ;;  %1760 = vmatprep.mubr.msk.f32.mxu0 %vm1057_vm9, %v1033_v40  ;;  %v1017_v44 = vsel %vm1011_vm7, %v1000_v41, %v808_v39 }
  0xfa   : > { %507 = vrot.lane.b32.xlu0 %v1683_v18, %s1975_s10 }
  0xfb   : > { %v620_v52 = vpop.permute.xlu1 %619 }
  0xfc   : > { %v2415_v5 = vpop.permute.xlu0 %429  ;;  %v968_v34 = vsel %vm960_vm4, %v951_v36, %v620_v52 }
  0xfd   : > { %821 = vrot.lane.b32.xlu1 %v1668_v46, %s1981_s15  ;;  %v918_v35 = vsel %vm909_vm1, %v2178_v29, %v2415_v5 }
  0xfe   : > { %759 = vrot.lane.b32.xlu0 %v1653_v47, %s1980_s26 }
  0xff   : > { %v872_v50 = vpop.permute.xlu1 %871 }
 0x100   : > { %v682_v54 = vpop.permute.xlu0 %681  ;;  %v1034_v53 = vsel %vm1028_vm8, %v1017_v44, %v872_v50 }
 0x101   : > { %633 = vrot.lane.b32.xlu1 %v1668_v46, %s1978_s13  ;;  %1761 = vmatmul.mubr.msk.f32.gmra.mrb[4].mxu0 %vm1057_vm9, %v1034_v53  ;;  %v984_v24 = vsel %vm977_vm5, %v967_v22, %v682_v54 }
 0x102   : > { %571 = vrot.lane.b32.xlu0 %v1653_v47, %s1977_s12  ;;  %s242_s12 = sand.u32 1, %s1589_s11  }
 0x103   : > { %v2429_v58 = vpop.permute.xlu1 %493 }
 0x104   : > { %v2431_v59 = vpop.permute.xlu0 %431  ;;  %v935_v41 = vsel %vm926_vm2, %v918_v35, %v2429_v58 }
 0x105   : > { %885 = vrot.lane.b32.xlu1 %v1684_v55, %s1982_s25  ;;  %v919_v29 = vsel %vm909_vm1, %v2188_v31, %v2431_v59 }
 0x106   : > { %823 = vrot.lane.b32.xlu0 %v1669_v57, %s1981_s15 }
 0x107   : > { %v746_v60 = vpop.permute.xlu1 %745 }
 0x108   : > { %v684_v61 = vpop.permute.xlu0 %683  ;;  %v1001_v23 = vsel %vm994_vm6, %v984_v24, %v746_v60 }
 0x109   : > { %697 = vrot.lane.b32.xlu1 %v1684_v55, %s1979_s14  ;;  %v985_v38 = vsel %vm977_vm5, %v968_v34, %v684_v61 }
 0x10a   : > { %635 = vrot.lane.b32.xlu0 %v1669_v57, %s1978_s13  ;;  %s243_s13 = ssub.s32 0, %s242_s12 }
 0x10b   : > { %v558_v2 = vpop.permute.xlu1 %557  ;;  %s2783_s13 = smov (!%p239_p11, %s243_s13), %s242_s12 }
 0x10c   : > { %v2438_v51 = vpop.permute.xlu0 %495  ;;  %v952_v44 = vsel %vm943_vm3, %v935_v41, %v558_v2  ;;  %p1591_p12 = scmp.lt.s32.totalorder %s2783_s13, 0 }
 0x10d   : > { %699 = vrot.lane.b32.xlu1 %v1639_v0, %s1979_s14  ;;  %v936_v5 = vsel %vm926_vm2, %v919_v29, %v2438_v51  ;;  %s249_s14 = sadd.s32 2, %s2783_s13 }
 0x10e   : > { %887 = vrot.lane.b32.xlu0 %v1639_v0, %s1982_s25  ;;  %s2785_s14 = smov (!%p1591_p12, %s249_s14), %s2783_s13 }
 0x10f   : > { %v810_v6 = vpop.permute.xlu1 %809 }
 0x110   : > { %v748_v7 = vpop.permute.xlu0 %747  ;;  %v1018_v12 = vsel %vm1011_vm7, %v1001_v23, %v810_v6 }
 0x111   : > { %763 = vrot.lane.b32.xlu1 %v1655_v3, %s1980_s26  ;;  %v1002_v25 = vsel %vm994_vm6, %v985_v38, %v748_v7 }
 0x112   : > { %761 = vrot.lane.b32.xlu0 %v1654_v56, %s1980_s26  ;;  %s1706_s26 = sshll.u32 %s2785_s14, 3  ;;  %s2651_s14 = scalar_lea.hbm %s2773_s3, %s1722_s9 }
 0x113   : > { %v622_v15 = vpop.permute.xlu1 %621  ;;  %s1256_s30 = ssub.s32 16, %s1706_s26  ;;  %s1421_s26 = scalar_lea.sflag [#allocation3], %s2573_s7 }
 0x114   : > { %v560_v18 = vpop.permute.xlu0 %559  ;;  %v969_v53 = vsel %vm960_vm4, %v952_v44, %v622_v15  ;;  %p1257_p13 = scmp.gt.s32.totalorder %s1256_s30, 0  ;;  %p1707_p0 = scmp.lt.s32.totalorder %s1256_s30, 8 }
 0x115   : > { %827 = vrot.lane.b32.xlu1 %v1671_v10, %s1981_s15  ;;  %v953_v58 = vsel %vm943_vm3, %v936_v5, %v560_v18 }
 0x116   : > { %825 = vrot.lane.b32.xlu0 %v1670_v11, %s1981_s15  ;;  %s1258_s6 = scalar_select %p1257_p13, %s1256_s30, 0 }
 0x117   : > { %v874_v27 = vpop.permute.xlu1 %873  ;;  %s1587_s15 = sshll.u32 %s2573_s7, 7 }
 0x118   : > { %v812_v28 = vpop.permute.xlu0 %811  ;;  %v1035_v19 = vsel %vm1028_vm8, %v1018_v12, %v874_v27  ;;  %s2787_s6 = smov (!%p1707_p0, %s1258_s6), 8 }
 0x119   : > { %891 = vrot.lane.b32.xlu1 %v1687_v4, %s1982_s25  ;;  %1763 = vmatprep.mubr.msk.f32.mxu0 %vm1057_vm9, %v1035_v19  ;;  %v1019_v13 = vsel %vm1011_vm7, %v1002_v25, %v812_v28  ;;  %s1712_s8 = sshll.u32 %s2787_s6, 4  ;;  %s1983_s6 = smov [#allocation2]  }
 0x11a   : > { %889 = vrot.lane.b32.xlu0 %v1686_v26, %s1982_s25  ;;  %s2589_s25 = scalar_lea.vmem [#allocation2], %s1587_s15 }
 0x11b   : > { %v624_v9 = vpop.permute.xlu1 %623  ;;  %s1442_s11 = sshll.u32 %s2589_s25, 4  ;;  %s2654_s11 = int_to_ptr.vmem [resolvable:$true] %s1442_s11 }
 0x11c   : > { %v434_v20 = vpop.permute.xlu0 %433  ;;  %v970_v6 = vsel %vm960_vm4, %v953_v58, %v624_v9  ;;  %s1851_s30 = scalar_lea.vmem %s2654_s11, 2048 }
 0x11d   : > { %v920_v4 = vsel %vm909_vm1, %v2208_v37, %v434_v20  ;;  %p1852_p1 = scmp.ne.s32.totalorder %s2654_s11, %s1851_s30 }
 0x11f   : > { %v876_v39 = vpop.permute.xlu1 %875  ;;  %p1853_p2 = pnand %p1852_p1, %p2057_p5 }
 0x120   : > { %v686_v40 = vpop.permute.xlu0 %685  ;;  %v1036_v42 = vsel %vm1028_vm8, %v1019_v13, %v876_v39 }
 0x121   : > { %1764 = vmatmul.mubr.msk.f32.gmra.mrb[6].mxu0 %vm1057_vm9, %v1036_v42  ;;  %v986_v55 = vsel %vm977_vm5, %v969_v53, %v686_v40  ;;  %p1854_p3 = pneg %p1853_p2 }
 0x123   : > { %v498_v21 = vpop.permute.xlu1 %497 }
 0x124   : > { %v436_v45 = vpop.permute.xlu0 %435  ;;  %v937_v26 = vsel %vm926_vm2, %v920_v4, %v498_v21 }
 0x125   : > { %v921_v37 = vsel %vm909_vm1, %v2222_v43, %v436_v45 }
 0x127   : > { %v750_v46 = vpop.permute.xlu1 %749 }
 0x128   : > { %v688_v33 = vpop.permute.xlu0 %687  ;;  %v1003_v57 = vsel %vm994_vm6, %v986_v55, %v750_v46 }
 0x129   : > { %v987_v7 = vsel %vm977_vm5, %v970_v6, %v688_v33 }
 0x12b   : > { %v562_v47 = vpop.permute.xlu1 %561 }
 0x12c   : > { %v500_v49 = vpop.permute.xlu0 %499  ;;  %v954_v12 = vsel %vm943_vm3, %v937_v26, %v562_v47 }
 0x12d   : > { %v938_v20 = vsel %vm926_vm2, %v921_v37, %v500_v49 }
 0x12f   : > { %v814_v17 = vpop.permute.xlu1 %813 }
 0x130   : > { %v752_v52 = vpop.permute.xlu0 %751  ;;  %v1020_v60 = vsel %vm1011_vm7, %v1003_v57, %v814_v17 }
 0x131   : > { %v1004_v1 = vsel %vm994_vm6, %v987_v7, %v752_v52 }
 0x133   : > { %v626_v50 = vpop.permute.xlu1 %625 }
 0x134   : > { %v564_v54 = vpop.permute.xlu0 %563  ;;  %v971_v19 = vsel %vm960_vm4, %v954_v12, %v626_v50 }
 0x135   : > { %v955_v25 = vsel %vm943_vm3, %v938_v20, %v564_v54 }
 0x137   : > { %v878_v61 = vpop.permute.xlu1 %877 }
 0x138   : > { %v816_v0 = vpop.permute.xlu0 %815  ;;  %v1037_v3 = vsel %vm1028_vm8, %v1020_v60, %v878_v61 }
 0x139   : > { %1766 = vmatprep.mubr.msk.f32.mxu1 %vm1057_vm9, %v1037_v3  ;;  %v1021_v8 = vsel %vm1011_vm7, %v1004_v1, %v816_v0 }
 0x13b   : > { %v628_v2 = vpop.permute.xlu1 %627 }
 0x13c   : > { %v438_v56 = vpop.permute.xlu0 %437  ;;  %v972_v40 = vsel %vm960_vm4, %v955_v25, %v628_v2 }
 0x13d   : > { %v922_v54 = vsel %vm909_vm1, %v2255_v62, %v438_v56 }
 0x13f   : > { %v880_v10 = vpop.permute.xlu1 %879 }
 0x140   : > { %v690_v11 = vpop.permute.xlu0 %689  ;;  %v1038_v31 = vsel %vm1028_vm8, %v1021_v8, %v880_v10 }
 0x141   : > { %1767 = vmatmul.mubr.msk.f32.vlgmr.msra.gmra.mrb[0].mxu1 %vm1057_vm9, %v1038_v31  ;;  %v988_v30 = vsel %vm977_vm5, %v971_v19, %v690_v11 }
 0x143   : > { %v502_v59 = vpop.permute.xlu1 %501 }
 0x144   : > { %v2504_v51 = vpop.permute.xlu0 %439  ;;  %v939_v53 = vsel %vm926_vm2, %v922_v54, %v502_v59 }
 0x145   : > { %v923_v2 = vsel %vm909_vm1, %v2280_v16, %v2504_v51 }
 0x147   : > { %v754_v14 = vpop.permute.xlu1 %753 }
 0x148   : > { %v692_v15 = vpop.permute.xlu0 %691  ;;  %v1005_v32 = vsel %vm994_vm6, %v988_v30, %v754_v14  ;;  %v1261_v30 = vlaneseq }
 0x149   : > { %v989_v42 = vsel %vm977_vm5, %v972_v40, %v692_v15  ;;  %v2577_v40 = vstv %s1712_s8  ;;  %s1855_s8 = sshll.u32 %s1983_s6, 4  ;;  %s1856_s8 = int_to_ptr.vmem [resolvable:$false] %s1855_s8 }
 0x14a   : > { %s1857_s15 = scalar_lea.vmem %s1856_s8, 4096  ;;  %p1858_p4 = scmp.lt.s32.totalorder %s2654_s11, %s1856_s8 }
 0x14b   : > { %v566_v18 = vpop.permute.xlu1 %565  ;;  %p1859_p7 = scmp.lt.s32.totalorder %s1857_s15, %s1851_s30 }
 0x14c   : > { %v504_v22 = vpop.permute.xlu0 %503  ;;  %v956_v55 = vsel %vm943_vm3, %v939_v53, %v566_v18 }
 0x14d   : > { %v940_v56 = vsel %vm926_vm2, %v923_v2, %v504_v22  ;;  %p1860_p8 = por %p1859_p7, %p1858_p4 }
 0x14f   : > { %v818_v24 = vpop.permute.xlu1 %817  ;;  %p1861_p9 = pnand %p1860_p8, %p1854_p3 }
 0x150   : > { %v756_v23 = vpop.permute.xlu0 %755  ;;  %v1022_v36 = vsel %vm1011_vm7, %v1005_v32, %v818_v24 }
 0x151   : > { %v1006_v21 = vsel %vm994_vm6, %v989_v42, %v756_v23  ;;  %v2582_v42 = vld [vmem:[%s2772_s2] ss:$0 sm:$0xff] }
 0x153   : > { %v630_v27 = vpop.permute.xlu1 %629 }
 0x154   : > { %v568_v28 = vpop.permute.xlu0 %567  ;;  %v973_v61 = vsel %vm960_vm4, %v956_v55, %v630_v27 }
 0x155   : > { %v957_v6 = vsel %vm943_vm3, %v940_v56, %v568_v28 }
 0x157   : > { %v882_v9 = vpop.permute.xlu1 %881 }
 0x158   : > { %v820_v34 = vpop.permute.xlu0 %819  ;;  %v1039_v38 = vsel %vm1028_vm8, %v1022_v36, %v882_v9 }
 0x159   : > { %1769 = vmatprep.mubr.msk.f32.mxu1 %vm1057_vm9, %v1039_v38  ;;  %v1023_v46 = vsel %vm1011_vm7, %v1006_v21, %v820_v34 }
 0x15b   : > { %v632_v13 = vpop.permute.xlu1 %631 }
 0x15c   : > { %v442_v39 = vpop.permute.xlu0 %441  ;;  %v974_v8 = vsel %vm960_vm4, %v957_v6, %v632_v13  ;;  %v2569_v13 = vshrl.u32 %v1261_v30, 7 }
 0x15d   : > { %v924_v18 = vsel %vm909_vm1, %v2323_v48, %v442_v39 }
 0x15e   : > { %v1263_v39 = vadd.s32 8, %v2569_v13  ;;  %vm1280_vm11 = vcmp.lt.s32.totalorder %v2569_v13, %v2577_v40  ;;  %v1266_v2 = vadd.s32 32, %v2569_v13 }
 0x15f   : > { %v884_v43 = vpop.permute.xlu1 %883 }
 0x160   : > { %v694_v45 = vpop.permute.xlu0 %693  ;;  %v1040_v33 = vsel %vm1028_vm8, %v1023_v46, %v884_v43  ;;  %vm1281_vm10 = vcmp.lt.s32.totalorder %v1263_v39, %v2577_v40  ;;  %vm1284_vm15 = vcmp.lt.s32.totalorder %v1266_v2, %v2577_v40 }
 0x161   : > { %1770 = vmatmul.mubr.msk.f32.gmra.mrb[2].mxu1 %vm1057_vm9, %v1040_v33  ;;  %v990_v0 = vsel %vm977_vm5, %v973_v61, %v694_v45 }
 0x163   : > { %v506_v47 = vpop.permute.xlu1 %505 }
 0x164   : > { %v444_v49 = vpop.permute.xlu0 %443  ;;  %v941_v24 = vsel %vm926_vm2, %v924_v18, %v506_v47  ;;  %v1268_v18 = vadd.s32 48, %v2569_v13 }
 0x165   : > { %v925_v22 = vsel %vm909_vm1, %v2349_v63, %v444_v49 }
 0x166   : > { %vm1286_vm1 = vcmp.lt.s32.totalorder %v1268_v18, %v2577_v40 }
 0x167   : > { %v758_v17 = vpop.permute.xlu1 %757 }
 0x168   : > { %v696_v52 = vpop.permute.xlu0 %695  ;;  %v1007_v3 = vsel %vm994_vm6, %v990_v0, %v758_v17 }
 0x169   : > { %v991_v10 = vsel %vm977_vm5, %v974_v8, %v696_v52 }
 0x16b   : > { %v570_v35 = vpop.permute.xlu1 %569 }
 0x16c   : > { %v508_v41 = vpop.permute.xlu0 %507  ;;  %v958_v4 = vsel %vm943_vm3, %v941_v24, %v570_v35 }
 0x16d   : > { %v942_v23 = vsel %vm926_vm2, %v925_v22, %v508_v41  ;;  %v1265_v41 = vadd.s32 24, %v2569_v13 }
 0x16f   : > { %v822_v44 = vpop.permute.xlu1 %821  ;;  %vm1283_vm12 = vcmp.lt.s32.totalorder %v1265_v41, %v2577_v40 }
 0x170   : > { %v760_v50 = vpop.permute.xlu0 %759  ;;  %v1024_v29 = vsel %vm1011_vm7, %v1007_v3, %v822_v44  ;;  %v1264_v44 = vadd.s32 16, %v2569_v13 }
 0x171   : > { %v1008_v11 = vsel %vm994_vm6, %v991_v10, %v760_v50 }
 0x172   : > { %vm1282_vm13 = vcmp.lt.s32.totalorder %v1264_v44, %v2577_v40 }
 0x173   : > { %v634_v57 = vpop.permute.xlu1 %633 }
 0x174   : > { %v572_v60 = vpop.permute.xlu0 %571  ;;  %v975_v28 = vsel %vm960_vm4, %v958_v4, %v634_v57 }
 0x175   : > { %v959_v26 = vsel %vm943_vm3, %v942_v23, %v572_v60 }
 0x177   : > { %v886_v5 = vpop.permute.xlu1 %885 }
 0x178   : > { %v824_v58 = vpop.permute.xlu0 %823  ;;  %v1041_v62 = vsel %vm1028_vm8, %v1024_v29, %v886_v5 }
 0x179   : > { %1772 = vmatprep.mubr.msk.f32.mxu1 %vm1057_vm9, %v1041_v62  ;;  %v1025_v31 = vsel %vm1011_vm7, %v1008_v11, %v824_v58  ;;  %v1267_v62 = vadd.s32 40, %v2569_v13 }
 0x17b   : > { %v698_v7 = vpop.permute.xlu1 %697  ;;  %vm1285_vm14 = vcmp.lt.s32.totalorder %v1267_v62, %v2577_v40 }
 0x17c   : > { %v636_v1 = vpop.permute.xlu0 %635  ;;  %v992_v48 = vsel %vm977_vm5, %v975_v28, %v698_v7 }
 0x17d   : > { %v976_v19 = vsel %vm960_vm4, %v959_v26, %v636_v1 }
 0x17f   : > { %v700_v59 = vpop.permute.xlu1 %699 }
 0x180   : > { %v888_v14 = vpop.permute.xlu0 %887  ;;  %v993_v63 = vsel %vm977_vm5, %v976_v19, %v700_v59 }
 0x181   : > { %v1042_v16 = vsel %vm1028_vm8, %v1025_v31, %v888_v14 }
 0x182   : > { %1773 = vmatmul.mubr.msk.f32.gmra.mrb[4].mxu1 %vm1057_vm9, %v1042_v16 }
 0x183   : > { %v764_v51 = vpop.permute.xlu1 %763 }
 0x184   : > { %v762_v15 = vpop.permute.xlu0 %761  ;;  %v1010_v32 = vsel %vm994_vm6, %v993_v63, %v764_v51 }
 0x185   : > { %v1009_v36 = vsel %vm994_vm6, %v992_v48, %v762_v15  ;;  %v1269_v15 = vadd.s32 56, %v2569_v13 }
 0x187   : > { %v828_v12 = vpop.permute.xlu1 %827  ;;  %vm1287_vm0 = vcmp.lt.s32.totalorder %v1269_v15, %v2577_v40 }
 0x188   : > { %v826_v27 = vpop.permute.xlu0 %825  ;;  %v1027_v9 = vsel %vm1011_vm7, %v1010_v32, %v828_v12  ;;  %v1271_v32 = vadd.s32 72, %v2569_v13 }
 0x189   : > { %v1026_v34 = vsel %vm1011_vm7, %v1009_v36, %v826_v27  ;;  %v1270_v36 = vadd.s32 64, %v2569_v13 }
 0x18a   : > { %vm1289_vm2 = vcmp.lt.s32.totalorder %v1271_v32, %v2577_v40 }
 0x18b   : > { %v892_v38 = vpop.permute.xlu1 %891  ;;  %vm1288_vm3 = vcmp.lt.s32.totalorder %v1270_v36, %v2577_v40 }
 0x18c   : > { %v890_v37 = vpop.permute.xlu0 %889  ;;  %v1044_v20 = vsel %vm1028_vm8, %v1027_v9, %v892_v38 }
 0x18d   : > { %v1043_v25 = vsel %vm1028_vm8, %v1026_v34, %v890_v37 }
 0x18e   : > { %1775 = vmatprep.mubr.msk.f32.mxu1 %vm1057_vm9, %v1043_v25 }
 0x18f   : > { %1776 = vmatmul.mubr.msk.f32.gmra.mrb[6].mxu1 %vm1057_vm9, %v1044_v20 }
 0x194   : > { %v1756_v21 = vpop.f32.mrb[0].mxu0 }
 0x195   : > { %v1182_v46 = vadd.f32 %v1756_v21, %v2582_v42  ;;  %v1176_v43 = vpop.f32.mrb[1].mxu0 }
 0x196   : > { %v1177_v45 = vadd.f32 %v2582_v42, %v1176_v43 }
 0x197   : > { %v1329_v33 = vsel %vm1281_vm10, %v1182_v46, 0.0  ;;  %1405 = vst [vmem:[%s2589_s25 + $0x8] sm:$0xff] %v1182_v46 }
 0x198   : > { %v1367_v47 = vmul.f32 %v1329_v33, %v1329_v33  ;;  %v1328_v49 = vsel %vm1280_vm11, %v1177_v45, 0.0  ;;  %1404 = vst [vmem:[%s2589_s25] sm:$0xff] %v1177_v45 }
 0x199   : > { %v1344_v17 = vadd.f32 %v1329_v33, %v1328_v49  ;;  %v1366_v52 = vmul.f32 %v1328_v49, %v1328_v49  ;;  %v1272_v49 = vadd.s32 80, %v2569_v13 }
 0x19b   : > { %v1382_v35 = vadd.f32 %v1367_v47, %v1366_v52  ;;  %v1273_v47 = vadd.s32 88, %v2569_v13  ;;  %vm1290_vm5 = vcmp.lt.s32.totalorder %v1272_v49, %v2577_v40 }
 0x19d   : > { %vm1291_vm4 = vcmp.lt.s32.totalorder %v1273_v47, %v2577_v40 }
 0x1b4   : > { %v1759_v50 = vpop.f32.mrb[2].mxu0 }
 0x1b5   : > { %v1192_v54 = vadd.f32 %v1759_v50, %v2582_v42  ;;  %v1186_v53 = vpop.f32.mrb[3].mxu0 }
 0x1b6   : > { %v1187_v55 = vadd.f32 %v2582_v42, %v1186_v53 }
 0x1b7   : > { %1407 = vst [vmem:[%s2589_s25 + $0x18] sm:$0xff] %v1192_v54  ;;  %v1331_v57 = vsel %vm1283_vm12, %v1192_v54, 0.0 }
 0x1b8   : > { %v1330_v60 = vsel %vm1282_vm13, %v1187_v55, 0.0  ;;  %1406 = vst [vmem:[%s2589_s25 + $0x10] sm:$0xff] %v1187_v55  ;;  %v1369_v3 = vmul.f32 %v1331_v57, %v1331_v57 }
 0x1b9   : > { %v1345_v61 = vadd.f32 %v1344_v17, %v1330_v60  ;;  %v1368_v0 = vmul.f32 %v1330_v60, %v1330_v60 }
 0x1bb   : > { %v1383_v29 = vadd.f32 %v1382_v35, %v1368_v0  ;;  %v1346_v5 = vadd.f32 %v1345_v61, %v1331_v57  ;;  %v1275_v0 = vadd.s32 104, %v2569_v13 }
 0x1bd   : > { %v1384_v58 = vadd.f32 %v1383_v29, %v1369_v3  ;;  %v1274_v3 = vadd.s32 96, %v2569_v13  ;;  %vm1293_vm6 = vcmp.lt.s32.totalorder %v1275_v0, %v2577_v40 }
 0x1bf   : > { %vm1292_vm7 = vcmp.lt.s32.totalorder %v1274_v3, %v2577_v40 }
 0x1d4   : > { %v1762_v56 = vpop.f32.mrb[4].mxu0 }
 0x1d5   : > { %v1202_v6 = vadd.f32 %v1762_v56, %v2582_v42  ;;  %v1196_v7 = vpop.f32.mrb[5].mxu0 }
 0x1d6   : > { %v1197_v1 = vadd.f32 %v2582_v42, %v1196_v7 }
 0x1d7   : > { %1409 = vst [vmem:[%s2589_s25 + $0x28] sm:$0xff] %v1202_v6  ;;  %v1333_v8 = vsel %vm1285_vm14, %v1202_v6, 0.0 }
 0x1d8   : > { %v1332_v10 = vsel %vm1284_vm15, %v1197_v1, 0.0  ;;  %1408 = vst [vmem:[%s2589_s25 + $0x20] sm:$0xff] %v1197_v1  ;;  %v1371_v59 = vmul.f32 %v1333_v8, %v1333_v8 }
 0x1d9   : > { %v1347_v11 = vadd.f32 %v1346_v5, %v1332_v10  ;;  %v1370_v31 = vmul.f32 %v1332_v10, %v1332_v10 }
 0x1db   : > { %v1385_v14 = vadd.f32 %v1384_v58, %v1370_v31  ;;  %v1348_v16 = vadd.f32 %v1347_v11, %v1333_v8  ;;  %v1277_v31 = vadd.s32 120, %v2569_v13 }
 0x1dd   : > { %v1386_v51 = vadd.f32 %v1385_v14, %v1371_v59  ;;  %v1276_v59 = vadd.s32 112, %v2569_v13  ;;  %vm1295_vm8 = vcmp.lt.s32.totalorder %v1277_v31, %v2577_v40 }
 0x1df   : > { %vm1294_vm9 = vcmp.lt.s32.totalorder %v1276_v59, %v2577_v40 }
 0x1f4   : > { %v1765_v22 = vpop.f32.mrb[6].mxu0 }
 0x1f5   : > { %v1212_v24 = vadd.f32 %v1765_v22, %v2582_v42  ;;  %v1206_v23 = vpop.f32.mrb[7].mxu0 }
 0x1f6   : > { %v1207_v4 = vadd.f32 %v2582_v42, %v1206_v23 }
 0x1f7   : > { %1411 = vst [vmem:[%s2589_s25 + $0x38] sm:$0xff] %v1212_v24  ;;  %v1335_v26 = vsel %vm1287_vm0, %v1212_v24, 0.0 }
 0x1f8   : > { %v1334_v12 = vsel %vm1286_vm1, %v1207_v4, 0.0  ;;  %1410 = vst [vmem:[%s2589_s25 + $0x30] sm:$0xff] %v1207_v4  ;;  %v1373_v19 = vmul.f32 %v1335_v26, %v1335_v26 }
 0x1f9   : > { %v1349_v27 = vadd.f32 %v1348_v16, %v1334_v12  ;;  %v1372_v28 = vmul.f32 %v1334_v12, %v1334_v12 }
 0x1fb   : > { %v1387_v48 = vadd.f32 %v1386_v51, %v1372_v28  ;;  %v1350_v63 = vadd.f32 %v1349_v27, %v1335_v26 }
 0x1fd   : > { %v1388_v30 = vadd.f32 %v1387_v48, %v1373_v19 }
 0x214   : > { %v1768_v9 = vpop.f32.mrb[0].mxu1 }
 0x215   : > { %v1222_v34 = vadd.f32 %v1768_v9, %v2582_v42  ;;  %v1216_v38 = vpop.f32.mrb[1].mxu1 }
 0x216   : > { %v1217_v37 = vadd.f32 %v2582_v42, %v1216_v38 }
 0x217   : > { %1413 = vst [vmem:[%s2589_s25 + $0x48] sm:$0xff] %v1222_v34  ;;  %v1337_v20 = vsel %vm1289_vm2, %v1222_v34, 0.0 }
 0x218   : > { %v1336_v25 = vsel %vm1288_vm3, %v1217_v37, 0.0  ;;  %1412 = vst [vmem:[%s2589_s25 + $0x40] sm:$0xff] %v1217_v37  ;;  %v1375_v46 = vmul.f32 %v1337_v20, %v1337_v20 }
 0x219   : > { %v1351_v39 = vadd.f32 %v1350_v63, %v1336_v25  ;;  %v1374_v21 = vmul.f32 %v1336_v25, %v1336_v25 }
 0x21b   : > { %v1389_v43 = vadd.f32 %v1388_v30, %v1374_v21  ;;  %v1352_v45 = vadd.f32 %v1351_v39, %v1337_v20 }
 0x21d   : > { %v1390_v33 = vadd.f32 %v1389_v43, %v1375_v46 }
 0x234   : > { %v1771_v17 = vpop.f32.mrb[2].mxu1 }
 0x235   : > { %v1232_v52 = vadd.f32 %v1771_v17, %v2582_v42  ;;  %v1226_v35 = vpop.f32.mrb[3].mxu1 }
 0x236   : > { %v1227_v41 = vadd.f32 %v2582_v42, %v1226_v35 }
 0x237   : > { %1415 = vst [vmem:[%s2589_s25 + $0x58] sm:$0xff] %v1232_v52  ;;  %v1339_v44 = vsel %vm1291_vm4, %v1232_v52, 0.0 }
 0x238   : > { %v1338_v50 = vsel %vm1290_vm5, %v1227_v41, 0.0  ;;  %1414 = vst [vmem:[%s2589_s25 + $0x50] sm:$0xff] %v1227_v41  ;;  %v1377_v55 = vmul.f32 %v1339_v44, %v1339_v44 }
 0x239   : > { %v1353_v54 = vadd.f32 %v1352_v45, %v1338_v50  ;;  %v1376_v53 = vmul.f32 %v1338_v50, %v1338_v50 }
 0x23b   : > { %v1391_v57 = vadd.f32 %v1390_v33, %v1376_v53  ;;  %v1354_v60 = vadd.f32 %v1353_v54, %v1339_v44 }
 0x23d   : > { %v1392_v61 = vadd.f32 %v1391_v57, %v1377_v55 }
 0x255   : > { %v1774_v29 = vpop.f32.mrb[4].mxu1 }
 0x256   : > { %v1242_v5 = vadd.f32 %v1774_v29, %v2582_v42  ;;  %v1236_v58 = vpop.f32.mrb[5].mxu1 }
 0x257   : > { %v1237_v62 = vadd.f32 %v2582_v42, %v1236_v58 }
 0x258   : > { %1417 = vst [vmem:[%s2589_s25 + $0x68] sm:$0xff] %v1242_v5  ;;  %v1341_v2 = vsel %vm1293_vm6, %v1242_v5, 0.0 }
 0x259   : > { %v1340_v56 = vsel %vm1292_vm7, %v1237_v62, 0.0  ;;  %1416 = vst [vmem:[%s2589_s25 + $0x60] sm:$0xff] %v1237_v62  ;;  %v1379_v1 = vmul.f32 %v1341_v2, %v1341_v2 }
 0x25a   : > { %v1355_v6 = vadd.f32 %v1354_v60, %v1340_v56  ;;  %v1378_v7 = vmul.f32 %v1340_v56, %v1340_v56 }
 0x25c   : > { %v1393_v8 = vadd.f32 %v1392_v61, %v1378_v7  ;;  %v1356_v10 = vadd.f32 %v1355_v6, %v1341_v2 }
 0x25e   : > { %v1394_v11 = vadd.f32 %v1393_v8, %v1379_v1 }
 0x262   : > { %v1777_v14 = vpop.f32.mrb[6].mxu1 }
 0x263   : > { %v1252_v16 = vadd.f32 %v1777_v14, %v2582_v42  ;;  %v1246_v51 = vpop.f32.mrb[7].mxu1 }
 0x264   : > { %v1247_v15 = vadd.f32 %v2582_v42, %v1246_v51 }
 0x265   : > { %1419 = vst [vmem:[%s2589_s25 + $0x78] sm:$0xff] %v1252_v16  ;;  %v1343_v13 = vsel %vm1295_vm8, %v1252_v16, 0.0 }
 0x266   : > { %v1342_v18 = vsel %vm1294_vm9, %v1247_v15, 0.0  ;;  %1418 = vst [vmem:[%s2589_s25 + $0x70] sm:$0xff] %v1247_v15 }
 0x267   : > { %v1357_v22 = vadd.f32 %v1356_v10, %v1342_v18  ;;  %v1380_v24 = vmul.f32 %v1342_v18, %v1342_v18 }
 0x268   : > { %1864 = shalt.err (!%p1861_p9)
}
 0x269   : > { %s1865_s16 = scalar_lea.hbm %s2651_s14, 2048  ;;  %s1869_s9 = scalar_lea.hbm %s2773_s3, 8192 }
 0x26a   : > { %p1866_p10 = scmp.ne.s32.totalorder %s2651_s14, %s1865_s16  ;;  %p1870_p13 = scmp.lt.u32.totalorder %s2651_s14, %s2773_s3 }
 0x26b   : > { %p1871_p0 = scmp.lt.u32.totalorder %s1869_s9, %s1865_s16  ;;  %p1873_p2 = scmp.lt.u32.totalorder %s1865_s16, %s2651_s14 }
 0x26c   : > { %p1867_p11 = pnand %p1866_p10, %p2057_p5 }
 0x26d   : > { %p1872_p1 = por %p1871_p0, %p1870_p13 }
 0x26e   : > { %p1868_p12 = pneg %p1867_p11 }
 0x26f   : > { %p1874_p3 = por %p1873_p2, %p1872_p1 }
 0x271   : > { %p1875_p4 = pnand %p1874_p3, %p1868_p12 }
 0x273   : > { %1878 = shalt.err (!%p1875_p4)
}
 0x274   : > { %s1984_s30 = smov 128   ;;  %v1381_v40 = vmul.f32 %v1343_v13, %v1343_v13  ;;  %v1358_v42 = vadd.f32 %v1357_v22, %v1343_v13  ;;  %v1395_v23 = vadd.f32 %v1394_v11, %v1380_v24  ;;  %s1425_s6 = sand.u32 1, %s2038_s22  }
 0x275   : > { %1793 = dma.vmem_to_hbm [thread:$0]  (%p2057_p5), %s2654_s11, 2048, %s2651_s14, %s1421_s26, %s1984_s30, %s1984_s30, %s1975_s10  }
 0x276   : > { %v1359_v4 = vrot.slane %v1358_v42, 4  ;;  %v1396_v26 = vadd.f32 %v1395_v23, %v1381_v40  ;;  %s1716_s8 = sshll.u32 %s2038_s22, 4  ;;  %s227_s15 = scalar_lea.vmem [#allocation4], %s2573_s7 }
 0x277   : > { %s1458_s16 = sshll.u32 %s227_s15, 4  ;;  %s233_s10 = scalar_lea.vmem [#allocation6], %s2573_s7  ;;  %s2694_s16 = int_to_ptr.vmem [resolvable:$true] %s1458_s16 }
 0x278   : > { %v1360_v12 = vadd.f32 %v1359_v4, %v1358_v42  ;;  %v1397_v27 = vrot.slane %v1396_v26, 4  ;;  %s1471_s11 = sshll.u32 %s233_s10, 4  ;;  %s2692_s17 = scalar_lea.hbm %s2774_s4, %s1716_s8  ;;  %s2701_s11 = int_to_ptr.vmem [resolvable:$true] %s1471_s11 }
 0x279   : > { %s2699_s9 = scalar_lea.hbm %s2775_s5, %s1716_s8  ;;  %s2703_s12 = scalar_lea.sflag [#allocation5], %s1425_s6 }
 0x27a   : > { %v1398_v28 = vadd.f32 %v1397_v27, %v1396_v26  ;;  %v1361_v19 = vrot.slane %v1360_v12, 2  ;;  %s1879_s13 = scalar_lea.vmem %s2694_s16, 16  ;;  %s1985_s30 = smov [#allocation4]  }
 0x27b   : > { %p1880_p7 = scmp.ne.s32.totalorder %s2694_s16, %s1879_s13  ;;  %s1883_s14 = sshll.u32 %s1985_s30, 4  ;;  %s1884_s14 = int_to_ptr.vmem [resolvable:$false] %s1883_s14 }
 0x27c   : > { %v1399_v48 = vrot.slane %v1398_v28, 2  ;;  %v1362_v63 = vadd.f32 %v1361_v19, %v1360_v12  ;;  %s1885_s26 = scalar_lea.vmem %s1884_s14, 32  ;;  %p1886_p10 = scmp.lt.s32.totalorder %s2694_s16, %s1884_s14 }
 0x27d   : > { %p1881_p8 = pnand %p1880_p7, %p2057_p5  ;;  %p1887_p11 = scmp.lt.s32.totalorder %s1885_s26, %s1879_s13 }
 0x27e   : > { %v1363_v30 = vrot.slane %v1362_v63, 1  ;;  %v1400_v32 = vadd.f32 %v1399_v48, %v1398_v28 }
 0x27f   : > { %p1882_p9 = pneg %p1881_p8  ;;  %p1888_p12 = por %p1887_p11, %p1886_p10 }
 0x280   : > { %v1364_v36 = vadd.f32 %v1363_v30, %v1362_v63  ;;  %v1401_v9 = vrot.slane %v1400_v32, 1 }
 0x281   : > { %p1889_p13 = pnand %p1888_p12, %p1882_p9 }
 0x282   : > { %1365 = vst [vmem:[%s227_s15] sm:$0x1] %v1364_v36  ;;  %v1402_v34 = vadd.f32 %v1401_v9, %v1400_v32 }
 0x283   : > { %1892 = shalt.err (!%p1889_p13)
}
 0x284   : > { %s1893_s6 = scalar_lea.hbm %s2692_s17, 16  ;;  %s1897_s22 = scalar_lea.hbm %s2774_s4, 64 }
 0x285   : > { %p1894_p0 = scmp.ne.s32.totalorder %s2692_s17, %s1893_s6  ;;  %p1898_p3 = scmp.lt.u32.totalorder %s2692_s17, %s2774_s4 }
 0x286   : > { %p1899_p4 = scmp.lt.u32.totalorder %s1897_s22, %s1893_s6  ;;  %p1901_p8 = scmp.lt.u32.totalorder %s1893_s6, %s2692_s17 }
 0x287   : > { %p1895_p1 = pnand %p1894_p0, %p2057_p5 }
 0x288   : > { %p1900_p7 = por %p1899_p4, %p1898_p3 }
 0x289   : > { %p1896_p2 = pneg %p1895_p1 }
 0x28a   : > { %p1902_p9 = por %p1901_p8, %p1900_p7 }
 0x28c   : > { %p1903_p10 = pnand %p1902_p9, %p1896_p2 }
 0x28e   : > { %1906 = shalt.err (!%p1903_p10)
}
 0x28f   : > { %1794 = dma.vmem_to_hbm [thread:$0]  (%p2057_p5), %s2694_s16, 16, %s2692_s17, %s2703_s12   ;;  %1403 = vst [vmem:[%s233_s10] sm:$0x1] %v1402_v34 }
 0x290   : > { %s1907_s13 = scalar_lea.vmem %s2701_s11, 16  ;;  %s1986_s14 = smov [#allocation6]  }
 0x291   : > { %p1908_p11 = scmp.ne.s32.totalorder %s2701_s11, %s1907_s13  ;;  %s1911_s26 = sshll.u32 %s1986_s14, 4  ;;  %s1912_s26 = int_to_ptr.vmem [resolvable:$false] %s1911_s26 }
 0x292   : > { %s1913_s6 = scalar_lea.vmem %s1912_s26, 32  ;;  %p1914_p0 = scmp.lt.s32.totalorder %s2701_s11, %s1912_s26 }
 0x293   : > { %p1909_p12 = pnand %p1908_p11, %p2057_p5  ;;  %p1915_p1 = scmp.lt.s32.totalorder %s1913_s6, %s1907_s13 }
 0x295   : > { %p1910_p13 = pneg %p1909_p12  ;;  %p1916_p2 = por %p1915_p1, %p1914_p0 }
 0x297   : > { %p1917_p3 = pnand %p1916_p2, %p1910_p13 }
 0x299   : > { %1920 = shalt.err (!%p1917_p3)
}
 0x29a   : > { %s1921_s7 = scalar_lea.hbm %s2699_s9, 16  ;;  %s1925_s17 = scalar_lea.hbm %s2775_s5, 64 }
 0x29b   : > { %p1922_p4 = scmp.ne.s32.totalorder %s2699_s9, %s1921_s7  ;;  %p1926_p9 = scmp.lt.u32.totalorder %s2699_s9, %s2775_s5 }
 0x29c   : > { %p1927_p10 = scmp.lt.u32.totalorder %s1925_s17, %s1921_s7  ;;  %p1929_p12 = scmp.lt.u32.totalorder %s1921_s7, %s2699_s9 }
 0x29d   : > { %p1923_p7 = pnand %p1922_p4, %p2057_p5 }
 0x29e   : > { %p1928_p11 = por %p1927_p10, %p1926_p9 }
 0x29f   : > { %p1924_p8 = pneg %p1923_p7 }
 0x2a0   : > { %p1930_p13 = por %p1929_p12, %p1928_p11 }
 0x2a2   : > { %p1931_p0 = pnand %p1930_p13, %p1924_p8 }
 0x2a4   : > { %1934 = shalt.err (!%p1931_p0)
}
 0x2a5   : > { %1795 = dma.vmem_to_hbm [thread:$0]  (%p2057_p5), %s2701_s11, 16, %s2699_s9, %s2703_s12  }
 0x2a6 PF: > { %p1809_p1 = scmp.ge.s32.totalorder %s1973_s21, 2  ;;  %s1483_s22 = sand.u32 1, %s1961_s18  }
 0x2a7   : > { %s1484_s25 = scalar_lea.sflag [#allocation3], %s1483_s22 }
 0x2a8   : > { %p1800_p2 = pnand %p1809_p1, %p2061_p6 }
 0x2aa   : > { %1952 = dma.done.wait (!%p1800_p2), %s1484_s25, 2048  }
 0x2ab   : > { %1954 = vsyncadd (!%p1800_p2), %s1484_s25, 4294965248  ;;  %s1492_s30 = sand.u32 1, %s1583_s23  }
 0x2ac   : > { %s1493_s13 = scalar_lea.sflag [#allocation5], %s1492_s30 }
 0x2ad   : > { %1956 = dma.done.wait (!%p1800_p2), %s1493_s13, 32  }
 0x2ae   : > { %1958 = vsyncadd (!%p1800_p2), %s1493_s13, 4294967264  ;;  %p19_p5 = scmp.ge.s32.totalorder %s2042_s24, 6   ;;  %s2778_s18 = smov %s1965_s19 }
 0x2af   : > { %s2779_s19 = smov %s1969_s20  ;;  %s2780_s20 = smov %s2055_s27 }
 0x2b0   : > { %s2781_s21 = smov %s2042_s24  ;;  %21 = sbr.rel (!%p19_p5) target bundleno = 5 (0x5), region = 101 }
 0x2b7   :  { %1505 = vsyncpa [#allocation3], 1 }
 0x2b8   :  { %1507 = vsyncpa [#allocation3 + $0x1], 1 }
 0x2b9   :  { %1508 = vsyncpa [#allocation5], 1 }
 0x2ba   :  { %1510 = vsyncpa [#allocation5 + $0x1], 1 }

</bundles_post_ra>
